<compile_context>
chip_gen: v7x
topology: tpu7x:2x2x1
jax: 0.10.0
libtpu: 0.0.40
codegen_flags: <defaults>
</compile_context>

<pallas_src>
import math
from functools import partial

import jax
import jax.numpy as jnp
from jax.experimental import pallas as pl
from jax.experimental.pallas import tpu as pltpu

# Set to jnp.bfloat16 on v6e/v7x for ~2x MXU throughput and half the HBM/VMEM bytes
# (accumulation stays f32; LayerNorm/softmax math stays f32 either way).
MATMUL_DTYPE = jnp.float32


# ----------------------------------------------------------------------------
# Kernels
# ----------------------------------------------------------------------------
def matmul_bias_kernel(x_ref, w_ref, b_ref, o_ref, acc_ref, *, activation=None):
    """o = act(x @ w + b), tiled over (M, N) with a K-reduction grid axis."""
    @pl.when(pl.program_id(2) == 0)
    def _():
        acc_ref[...] = jnp.zeros_like(acc_ref)

    acc_ref[...] += jnp.dot(
        x_ref[...].astype(MATMUL_DTYPE),
        w_ref[...].astype(MATMUL_DTYPE),
        preferred_element_type=jnp.float32,
    )

    @pl.when(pl.program_id(2) == pl.num_programs(2) - 1)
    def _():
        y = acc_ref[...] + b_ref[...]
        if activation == "relu":
            y = jnp.maximum(y, 0.0)
        o_ref[...] = y.astype(o_ref.dtype)


def matmul_residual_ln_kernel(x_ref, w_ref, b_ref, res_ref, g_ref, beta_ref,
                              o_ref, acc_ref, *, eps=1e-5):
    """o = LayerNorm(res + x @ w + b) * gamma + beta  (row tiles x K-reduction)."""
    @pl.when(pl.program_id(1) == 0)
    def _():
        acc_ref[...] = jnp.zeros_like(acc_ref)

    acc_ref[...] += jnp.dot(
        x_ref[...].astype(MATMUL_DTYPE),
        w_ref[...].astype(MATMUL_DTYPE),
        preferred_element_type=jnp.float32,
    )

    @pl.when(pl.program_id(1) == pl.num_programs(1) - 1)
    def _():
        h = res_ref[...] + acc_ref[...] + b_ref[...]            # (tm, D) f32
        mu = jnp.mean(h, axis=-1, keepdims=True)
        d = h - mu
        var = jnp.mean(d * d, axis=-1, keepdims=True)           # biased var (torch LN)
        y = d * jax.lax.rsqrt(var + eps) * g_ref[...] + beta_ref[...]
        o_ref[...] = y.astype(o_ref.dtype)


def attention_kernel(q_ref, k_ref, v_ref, o_ref, *, scale):
    """Scaled dot-product attention for one batch element, all heads batched (H, S, hd)."""
    q = q_ref[...].astype(MATMUL_DTYPE)
    k = k_ref[...].astype(MATMUL_DTYPE)
    s = jnp.einsum("hqd,hkd->hqk", q, k, preferred_element_type=jnp.float32) * scale
    m = jnp.max(s, axis=-1, keepdims=True)
    e = jnp.exp(s - m)
    p = e * pl.reciprocal(jnp.sum(e, axis=-1, keepdims=True), approx=True)
    ctx = jnp.einsum("hqk,hkd->hqd",
                     p.astype(MATMUL_DTYPE),
                     v_ref[...].astype(MATMUL_DTYPE),
                     preferred_element_type=jnp.float32)
    o_ref[...] = ctx.astype(o_ref.dtype)
    # TODO(synk): padding / future (causal) masks (mask != None path) are not wired in.


# ----------------------------------------------------------------------------
# Pallas wrappers (real grids, pipelined BlockSpecs)
# ----------------------------------------------------------------------------
def _fit(dim, pref):
    """Use the preferred tile if it evenly divides, else fall back to the full dim."""
    return pref if dim % pref == 0 else dim


def matmul_bias(x, w, b, *, activation=None, tm=256, tn=256, tk=512):
    M, K = x.shape
    _, N = w.shape
    tm, tn, tk = _fit(M, tm), _fit(N, tn), _fit(K, tk)
    return pl.pallas_call(
        partial(matmul_bias_kernel, activation=activation),
        out_shape=jax.ShapeDtypeStruct((M, N), jnp.float32),
        grid_spec=pltpu.PrefetchScalarGridSpec(
            num_scalar_prefetch=0,
            grid=(M // tm, N // tn, K // tk),
            in_specs=[
                pl.BlockSpec((tm, tk), lambda i, j, k: (i, k)),
                pl.BlockSpec((tk, tn), lambda i, j, k: (k, j)),
                pl.BlockSpec((1, tn), lambda i, j, k: (0, j)),
            ],
            out_specs=pl.BlockSpec((tm, tn), lambda i, j, k: (i, j)),
            scratch_shapes=[pltpu.VMEM((tm, tn), jnp.float32)],
        ),
        compiler_params=pltpu.CompilerParams(
            dimension_semantics=("parallel", "parallel", "arbitrary")),
    )(x, w, b)


def matmul_residual_ln(x, w, b, res, gamma, beta, *, eps=1e-5, tm=256, tk=512):
    M, K = x.shape
    _, N = w.shape  # N = d_model: kept whole in-block since LayerNorm reduces over it
    tm, tk = _fit(M, tm), _fit(K, tk)
    return pl.pallas_call(
        partial(matmul_residual_ln_kernel, eps=eps),
        out_shape=jax.ShapeDtypeStruct((M, N), jnp.float32),
        grid_spec=pltpu.PrefetchScalarGridSpec(
            num_scalar_prefetch=0,
            grid=(M // tm, K // tk),
            in_specs=[
                pl.BlockSpec((tm, tk), lambda i, k: (i, k)),   # x
                pl.BlockSpec((tk, N), lambda i, k: (k, 0)),    # w
                pl.BlockSpec((1, N), lambda i, k: (0, 0)),     # bias
                pl.BlockSpec((tm, N), lambda i, k: (i, 0)),    # residual
                pl.BlockSpec((1, N), lambda i, k: (0, 0)),     # gamma
                pl.BlockSpec((1, N), lambda i, k: (0, 0)),     # beta
            ],
            out_specs=pl.BlockSpec((tm, N), lambda i, k: (i, 0)),
            scratch_shapes=[pltpu.VMEM((tm, N), jnp.float32)],
        ),
        compiler_params=pltpu.CompilerParams(
            dimension_semantics=("parallel", "arbitrary")),
    )(x, w, b, res, gamma, beta)


def multihead_attention(q, k, v):
    # q, k, v: (B, H, S, hd)
    B, H, S, hd = q.shape
    scale = 1.0 / math.sqrt(hd)
    spec = pl.BlockSpec((None, H, S, hd), lambda b: (b, 0, 0, 0))
    return pl.pallas_call(
        partial(attention_kernel, scale=scale),
        out_shape=jax.ShapeDtypeStruct((B, H, S, hd), jnp.float32),
        grid_spec=pltpu.PrefetchScalarGridSpec(
            num_scalar_prefetch=0,
            grid=(B,),
            in_specs=[spec, spec, spec],
            out_specs=spec,
        ),
        compiler_params=pltpu.CompilerParams(dimension_semantics=("parallel",)),
    )(q, k, v)


# ----------------------------------------------------------------------------
# Parameters (deterministic, synthetic) and full forward
# ----------------------------------------------------------------------------
def positional_encoding_table(max_len, d_model):
    pos = jnp.arange(max_len, dtype=jnp.float32)[:, None]
    div = jnp.exp(jnp.arange(0, d_model, 2, dtype=jnp.float32)
                  * (-math.log(10000.0) / d_model))
    pe = jnp.zeros((max_len, d_model), jnp.float32)
    pe = pe.at[:, 0::2].set(jnp.sin(pos * div))
    pe = pe.at[:, 1::2].set(jnp.cos(pos * div))
    return pe[None]  # (1, max_len, d_model)


def init_params(key, vocab_size, d_model, num_heads, num_layers, ff_hidden_dim):
    def dense(key, fan_in, fan_out):
        kw, kb = jax.random.split(key)
        w = jax.random.normal(kw, (fan_in, fan_out), jnp.float32) * 0.02
        b = jax.random.normal(kb, (1, fan_out), jnp.float32) * 0.02
        return w, b

    keys = jax.random.split(key, 2 + num_layers)
    params = {
        "embedding": jax.random.normal(keys[0], (vocab_size, d_model), jnp.float32) * 0.02,
    }
    params["out_w"], params["out_b"] = dense(keys[1], d_model, vocab_size)

    blocks = []
    for l in range(num_layers):
        ks = jax.random.split(keys[2 + l], 6)
        wq, bq = dense(ks[0], d_model, d_model)
        wk, bk = dense(ks[1], d_model, d_model)
        wv, bv = dense(ks[2], d_model, d_model)
        wo, bo = dense(ks[3], d_model, d_model)
        w1, b1 = dense(ks[4], d_model, ff_hidden_dim)
        w2, b2 = dense(ks[5], ff_hidden_dim, d_model)
        blocks.append({
            # Q/K/V fused into one wide (D, 3D) matmul.
            "wqkv": jnp.concatenate([wq, wk, wv], axis=1),
            "bqkv": jnp.concatenate([bq, bk, bv], axis=1),
            "wo": wo, "bo": bo,
            "w1": w1, "b1": b1,
            "w2": w2, "b2": b2,
            "g1": jnp.ones((1, d_model), jnp.float32),
            "be1": jnp.zeros((1, d_model), jnp.float32),
            "g2": jnp.ones((1, d_model), jnp.float32),
            "be2": jnp.zeros((1, d_model), jnp.float32),
        })
    params["blocks"] = blocks
    return params


@partial(jax.jit, static_argnames=("num_heads",))
def transformer_forward(token_ids, params, pe_table, *, num_heads):
    # token_ids: (B, S) int32
    B, S = token_ids.shape
    emb = params["embedding"]
    D = emb.shape[1]
    H = num_heads
    hd = D // H

    # Embedding gather + positional encoding (plain-JAX glue; PE add fused here to save
    # a kernel launch). Activations then stay (B*S, D) for the whole stack.
    x = emb[token_ids] + pe_table[:, :S, :]          # (B, S, D)
    x = x.reshape(B * S, D)

    for blk in params["blocks"]:
        # --- fused Q/K/V projection: one wide matmul (B*S, 3D) ---
        qkv = matmul_bias(x, blk["wqkv"], blk["bqkv"])
        qkv = qkv.reshape(B, S, 3, H, hd).transpose(2, 0, 3, 1, 4)  # (3, B, H, S, hd)
        q, k, v = qkv[0], qkv[1], qkv[2]

        # --- batched multi-head attention (grid over batch) ---
        ctx = multihead_attention(q, k, v)                          # (B, H, S, hd)
        ctx = ctx.transpose(0, 2, 1, 3).reshape(B * S, D)

        # --- O-proj + residual + LayerNorm1 (fused) ---
        x = matmul_residual_ln(ctx, blk["wo"], blk["bo"], x, blk["g1"], blk["be1"])

        # --- FFN: (linear+ReLU) then (linear + residual + LayerNorm2) ---
        f = matmul_bias(x, blk["w1"], blk["b1"], activation="relu")
        x = matmul_residual_ln(f, blk["w2"], blk["b2"], x, blk["g2"], blk["be2"])

    # --- output projection to vocab (row/N/K-tiled matmul) ---
    V = params["out_w"].shape[1]
    logits = matmul_bias(x, params["out_w"], params["out_b"])
    return logits.reshape(B, S, V)


if __name__ == "__main__":
    vocab_size = 64
    d_model = 32
    max_len = 16
    num_heads = 4
    num_layers = 2
    ff_hidden_dim = 64
    batch, seq = 2, 8

    key = jax.random.PRNGKey(0)
    k_tok, k_par = jax.random.split(key)

    token_ids = jax.random.randint(k_tok, (batch, seq), 0, vocab_size, dtype=jnp.int32)
    params = init_params(k_par, vocab_size, d_model, num_heads, num_layers, ff_hidden_dim)
    pe_table = positional_encoding_table(max_len, d_model)

    logits = transformer_forward(token_ids, params, pe_table, num_heads=num_heads)
    logits = jax.block_until_ready(logits)

    assert logits.shape == (batch, seq, vocab_size)
    assert bool(jnp.all(jnp.isfinite(logits)))
    print("KERNEL_OK")
</pallas_src>

<mosaic_0001>
module attributes {stable_mosaic.version = 11 : i64} {
  func.func @matmul_bias_kernel(%arg0: i32, %arg1: i32, %arg2: i32, %arg3: memref<16x32xf32, #tpu.memory_space<vmem>>, %arg4: memref<32x96xf32, #tpu.memory_space<vmem>>, %arg5: memref<1x96xf32, #tpu.memory_space<vmem>>, %arg6: memref<16x96xf32, #tpu.memory_space<vmem>>, %arg7: memref<16x96xf32, #tpu.memory_space<vmem>>) attributes {dimension_semantics = [#tpu.dimension_semantics<parallel>, #tpu.dimension_semantics<parallel>, #tpu.dimension_semantics<arbitrary>], iteration_bounds = array<i64: 1, 1, 1>, scalar_prefetch = 0 : i64, scratch_operands = 1 : i64, tpu.core_type = #tpu.core_type<tc>, window_params = [{transform_indices = @transform_0, window_bounds = array<i64: 16, 32>}, {transform_indices = @transform_1, window_bounds = array<i64: 32, 96>}, {transform_indices = @transform_2, window_bounds = array<i64: 1, 96>}, {transform_indices = @transform_3, window_bounds = array<i64: 16, 96>}]} {
    %c0_i32 = arith.constant 0 : i32
    %0 = arith.cmpi eq, %arg2, %c0_i32 : i32
    %1 = arith.extui %0 : i1 to i32
    %c0_i32_0 = arith.constant 0 : i32
    %2 = arith.cmpi ne, %1, %c0_i32_0 : i32
    scf.if %2 {
      %cst_10 = arith.constant 0.000000e+00 : f32
      %12 = vector.broadcast %cst_10 : f32 to vector<16x96xf32>
      %c0_11 = arith.constant 0 : index
      %c0_12 = arith.constant 0 : index
      %13 = vector.load %arg7[%c0_11, %c0_12] : memref<16x96xf32, #tpu.memory_space<vmem>>, vector<16x96xf32>
      tpu.vector_store %arg7[%c0_11, %c0_12], %12 {strides = array<i32>} : memref<16x96xf32, #tpu.memory_space<vmem>>, vector<16x96xf32>,
    } else {
    }
    %c0 = arith.constant 0 : index
    %c0_1 = arith.constant 0 : index
    %3 = vector.load %arg7[%c0, %c0_1] : memref<16x96xf32, #tpu.memory_space<vmem>>, vector<16x96xf32>
    %c0_2 = arith.constant 0 : index
    %c0_3 = arith.constant 0 : index
    %4 = vector.load %arg3[%c0_2, %c0_3] : memref<16x32xf32, #tpu.memory_space<vmem>>, vector<16x32xf32>
    %c0_4 = arith.constant 0 : index
    %c0_5 = arith.constant 0 : index
    %5 = vector.load %arg4[%c0_4, %c0_5] : memref<32x96xf32, #tpu.memory_space<vmem>>, vector<32x96xf32>
    %cst = arith.constant dense<0.000000e+00> : vector<16x96xf32>
    %6 = tpu.matmul %4, %5, %cst {dimension_numbers = #tpu.dot_dimension_numbers<[1], [0], [0], [1], [0, 0, 1, 1], [], []>} : vector<16x32xf32>, vector<32x96xf32>, vector<16x96xf32> -> vector<16x96xf32>
    %7 = arith.addf %3, %6 : vector<16x96xf32>
    %c0_6 = arith.constant 0 : index
    %c0_7 = arith.constant 0 : index
    %8 = vector.load %arg7[%c0_6, %c0_7] : memref<16x96xf32, #tpu.memory_space<vmem>>, vector<16x96xf32>
    tpu.vector_store %arg7[%c0_6, %c0_7], %7 {strides = array<i32>} : memref<16x96xf32, #tpu.memory_space<vmem>>, vector<16x96xf32>,
    %c0_i32_8 = arith.constant 0 : i32
    %9 = arith.cmpi eq, %arg2, %c0_i32_8 : i32
    %10 = arith.extui %9 : i1 to i32
    %c0_i32_9 = arith.constant 0 : i32
    %11 = arith.cmpi ne, %10, %c0_i32_9 : i32
    scf.if %11 {
      %c0_10 = arith.constant 0 : index
      %c0_11 = arith.constant 0 : index
      %12 = vector.load %arg7[%c0_10, %c0_11] : memref<16x96xf32, #tpu.memory_space<vmem>>, vector<16x96xf32>
      %c0_12 = arith.constant 0 : index
      %c0_13 = arith.constant 0 : index
      %13 = vector.load %arg5[%c0_12, %c0_13] : memref<1x96xf32, #tpu.memory_space<vmem>>, vector<1x96xf32>
      %14 = vector.broadcast %13 : vector<1x96xf32> to vector<16x96xf32>
      %15 = arith.addf %12, %14 : vector<16x96xf32>
      %c0_14 = arith.constant 0 : index
      %c0_15 = arith.constant 0 : index
      %16 = vector.load %arg6[%c0_14, %c0_15] : memref<16x96xf32, #tpu.memory_space<vmem>>, vector<16x96xf32>
      tpu.vector_store %arg6[%c0_14, %c0_15], %15 {strides = array<i32>} : memref<16x96xf32, #tpu.memory_space<vmem>>, vector<16x96xf32>,
    } else {
    }
    return
  }
  func.func @transform_0(%arg0: i32, %arg1: i32, %arg2: i32) -> (i32, i32) {
    %c0_i32 = arith.constant 0 : i32
    return %arg0, %arg2 : i32, i32
  }
  func.func @transform_1(%arg0: i32, %arg1: i32, %arg2: i32) -> (i32, i32) {
    %c0_i32 = arith.constant 0 : i32
    return %arg2, %arg1 : i32, i32
  }
  func.func @transform_2(%arg0: i32, %arg1: i32, %arg2: i32) -> (i32, i32) {
    %c0_i32 = arith.constant 0 : i32
    %c0_i32_0 = arith.constant 0 : i32
    return %c0_i32, %arg1 : i32, i32
  }
  func.func @transform_3(%arg0: i32, %arg1: i32, %arg2: i32) -> (i32, i32) {
    %c0_i32 = arith.constant 0 : i32
    return %arg0, %arg1 : i32, i32
  }
}

module attributes {stable_mosaic.version = 11 : i64} {
  func.func @attention_kernel(%arg0: i32, %arg1: memref<1x4x8x8xf32, #tpu.memory_space<vmem>>, %arg2: memref<1x4x8x8xf32, #tpu.memory_space<vmem>>, %arg3: memref<1x4x8x8xf32, #tpu.memory_space<vmem>>, %arg4: memref<1x4x8x8xf32, #tpu.memory_space<vmem>>) attributes {dimension_semantics = [#tpu.dimension_semantics<parallel>], iteration_bounds = array<i64: 2>, scalar_prefetch = 0 : i64, scratch_operands = 0 : i64, tpu.core_type = #tpu.core_type<tc>, window_params = [{transform_indices = @transform_0, window_bounds = array<i64: 1, 4, 8, 8>}, {transform_indices = @transform_1, window_bounds = array<i64: 1, 4, 8, 8>}, {transform_indices = @transform_2, window_bounds = array<i64: 1, 4, 8, 8>}, {transform_indices = @transform_3, window_bounds = array<i64: 1, 4, 8, 8>}]} {
    %c0 = arith.constant 0 : index
    %c0_0 = arith.constant 0 : index
    %c0_1 = arith.constant 0 : index
    %c0_2 = arith.constant 0 : index
    %0 = vector.load %arg1[%c0, %c0_0, %c0_1, %c0_2] : memref<1x4x8x8xf32, #tpu.memory_space<vmem>>, vector<1x4x8x8xf32>
    %1 = vector.shape_cast %0 : vector<1x4x8x8xf32> to vector<4x8x8xf32>
    %c0_3 = arith.constant 0 : index
    %c0_4 = arith.constant 0 : index
    %c0_5 = arith.constant 0 : index
    %c0_6 = arith.constant 0 : index
    %2 = vector.load %arg2[%c0_3, %c0_4, %c0_5, %c0_6] : memref<1x4x8x8xf32, #tpu.memory_space<vmem>>, vector<1x4x8x8xf32>
    %3 = vector.shape_cast %2 : vector<1x4x8x8xf32> to vector<4x8x8xf32>
    "tpu.trace_start"() <{level = 10 : i32, message = "hqd,hkd->hqk"}> : () -> ()
    %cst = arith.constant dense<0.000000e+00> : vector<4x8x8xf32>
    %4 = tpu.matmul %1, %3, %cst {dimension_numbers = #tpu.dot_dimension_numbers<[2], [2], [1], [1], [0, 0, 0, 1, 1, 1], [0], [0]>} : vector<4x8x8xf32>, vector<4x8x8xf32>, vector<4x8x8xf32> -> vector<4x8x8xf32>
    "tpu.trace_stop"() : () -> ()
    %cst_7 = arith.constant 0.353553385 : f32
    %5 = vector.broadcast %cst_7 : f32 to vector<4x8x8xf32>
    %6 = arith.mulf %4, %5 : vector<4x8x8xf32>
    %cst_8 = arith.constant dense<0xFF800000> : vector<4x8xf32>
    %7 = vector.multi_reduction <maximumf>, %6, %cst_8 [2] : vector<4x8x8xf32> to vector<4x8xf32>
    %8 = vector.shape_cast %7 : vector<4x8xf32> to vector<4x8x1xf32>
    %9 = vector.broadcast %8 : vector<4x8x1xf32> to vector<4x8x8xf32>
    %10 = arith.subf %6, %9 : vector<4x8x8xf32>
    %11 = math.exp %10 : vector<4x8x8xf32>
    %cst_9 = arith.constant dense<0.000000e+00> : vector<4x8xf32>
    %12 = vector.multi_reduction <add>, %11, %cst_9 [2] : vector<4x8x8xf32> to vector<4x8xf32>
    %13 = vector.shape_cast %12 : vector<4x8xf32> to vector<4x8x1xf32>
    %14 = tpu.reciprocal %13 {approx = true} : vector<4x8x1xf32> -> vector<4x8x1xf32>
    %15 = vector.broadcast %14 : vector<4x8x1xf32> to vector<4x8x8xf32>
    %16 = arith.mulf %11, %15 : vector<4x8x8xf32>
    %c0_10 = arith.constant 0 : index
    %c0_11 = arith.constant 0 : index
    %c0_12 = arith.constant 0 : index
    %c0_13 = arith.constant 0 : index
    %17 = vector.load %arg3[%c0_10, %c0_11, %c0_12, %c0_13] : memref<1x4x8x8xf32, #tpu.memory_space<vmem>>, vector<1x4x8x8xf32>
    %18 = vector.shape_cast %17 : vector<1x4x8x8xf32> to vector<4x8x8xf32>
    "tpu.trace_start"() <{level = 10 : i32, message = "hqk,hkd->hqd"}> : () -> ()
    %cst_14 = arith.constant dense<0.000000e+00> : vector<4x8x8xf32>
    %19 = tpu.matmul %16, %18, %cst_14 {dimension_numbers = #tpu.dot_dimension_numbers<[2], [1], [1], [2], [0, 0, 0, 1, 1, 2], [0], [0]>} : vector<4x8x8xf32>, vector<4x8x8xf32>, vector<4x8x8xf32> -> vector<4x8x8xf32>
    "tpu.trace_stop"() : () -> ()
    %c0_15 = arith.constant 0 : index
    %c0_16 = arith.constant 0 : index
    %c0_17 = arith.constant 0 : index
    %c0_18 = arith.constant 0 : index
    %20 = vector.load %arg4[%c0_15, %c0_16, %c0_17, %c0_18] : memref<1x4x8x8xf32, #tpu.memory_space<vmem>>, vector<1x4x8x8xf32>
    %21 = vector.shape_cast %20 : vector<1x4x8x8xf32> to vector<4x8x8xf32>
    %22 = vector.shape_cast %19 : vector<4x8x8xf32> to vector<1x4x8x8xf32>
    tpu.vector_store %arg4[%c0_15, %c0_16, %c0_17, %c0_18], %22 {strides = array<i32>} : memref<1x4x8x8xf32, #tpu.memory_space<vmem>>, vector<1x4x8x8xf32>,
    return
  }
  func.func @transform_0(%arg0: i32) -> (i32, i32, i32, i32) {
    %c0_i32 = arith.constant 0 : i32
    %c0_i32_0 = arith.constant 0 : i32
    %c0_i32_1 = arith.constant 0 : i32
    %c0_i32_2 = arith.constant 0 : i32
    return %arg0, %c0_i32, %c0_i32_0, %c0_i32_1 : i32, i32, i32, i32
  }
  func.func @transform_1(%arg0: i32) -> (i32, i32, i32, i32) {
    %c0_i32 = arith.constant 0 : i32
    %c0_i32_0 = arith.constant 0 : i32
    %c0_i32_1 = arith.constant 0 : i32
    %c0_i32_2 = arith.constant 0 : i32
    return %arg0, %c0_i32, %c0_i32_0, %c0_i32_1 : i32, i32, i32, i32
  }
  func.func @transform_2(%arg0: i32) -> (i32, i32, i32, i32) {
    %c0_i32 = arith.constant 0 : i32
    %c0_i32_0 = arith.constant 0 : i32
    %c0_i32_1 = arith.constant 0 : i32
    %c0_i32_2 = arith.constant 0 : i32
    return %arg0, %c0_i32, %c0_i32_0, %c0_i32_1 : i32, i32, i32, i32
  }
  func.func @transform_3(%arg0: i32) -> (i32, i32, i32, i32) {
    %c0_i32 = arith.constant 0 : i32
    %c0_i32_0 = arith.constant 0 : i32
    %c0_i32_1 = arith.constant 0 : i32
    %c0_i32_2 = arith.constant 0 : i32
    return %arg0, %c0_i32, %c0_i32_0, %c0_i32_1 : i32, i32, i32, i32
  }
}

module attributes {stable_mosaic.version = 11 : i64} {
  func.func @matmul_bias_kernel(%arg0: i32, %arg1: i32, %arg2: i32, %arg3: memref<16x32xf32, #tpu.memory_space<vmem>>, %arg4: memref<32x64xf32, #tpu.memory_space<vmem>>, %arg5: memref<1x64xf32, #tpu.memory_space<vmem>>, %arg6: memref<16x64xf32, #tpu.memory_space<vmem>>, %arg7: memref<16x64xf32, #tpu.memory_space<vmem>>) attributes {dimension_semantics = [#tpu.dimension_semantics<parallel>, #tpu.dimension_semantics<parallel>, #tpu.dimension_semantics<arbitrary>], iteration_bounds = array<i64: 1, 1, 1>, scalar_prefetch = 0 : i64, scratch_operands = 1 : i64, tpu.core_type = #tpu.core_type<tc>, window_params = [{transform_indices = @transform_0, window_bounds = array<i64: 16, 32>}, {transform_indices = @transform_1, window_bounds = array<i64: 32, 64>}, {transform_indices = @transform_2, window_bounds = array<i64: 1, 64>}, {transform_indices = @transform_3, window_bounds = array<i64: 16, 64>}]} {
    %c0_i32 = arith.constant 0 : i32
    %0 = arith.cmpi eq, %arg2, %c0_i32 : i32
    %1 = arith.extui %0 : i1 to i32
    %c0_i32_0 = arith.constant 0 : i32
    %2 = arith.cmpi ne, %1, %c0_i32_0 : i32
    scf.if %2 {
      %cst_10 = arith.constant 0.000000e+00 : f32
      %12 = vector.broadcast %cst_10 : f32 to vector<16x64xf32>
      %c0_11 = arith.constant 0 : index
      %c0_12 = arith.constant 0 : index
      %13 = vector.load %arg7[%c0_11, %c0_12] : memref<16x64xf32, #tpu.memory_space<vmem>>, vector<16x64xf32>
      tpu.vector_store %arg7[%c0_11, %c0_12], %12 {strides = array<i32>} : memref<16x64xf32, #tpu.memory_space<vmem>>, vector<16x64xf32>,
    } else {
    }
    %c0 = arith.constant 0 : index
    %c0_1 = arith.constant 0 : index
    %3 = vector.load %arg7[%c0, %c0_1] : memref<16x64xf32, #tpu.memory_space<vmem>>, vector<16x64xf32>
    %c0_2 = arith.constant 0 : index
    %c0_3 = arith.constant 0 : index
    %4 = vector.load %arg3[%c0_2, %c0_3] : memref<16x32xf32, #tpu.memory_space<vmem>>, vector<16x32xf32>
    %c0_4 = arith.constant 0 : index
    %c0_5 = arith.constant 0 : index
    %5 = vector.load %arg4[%c0_4, %c0_5] : memref<32x64xf32, #tpu.memory_space<vmem>>, vector<32x64xf32>
    %cst = arith.constant dense<0.000000e+00> : vector<16x64xf32>
    %6 = tpu.matmul %4, %5, %cst {dimension_numbers = #tpu.dot_dimension_numbers<[1], [0], [0], [1], [0, 0, 1, 1], [], []>} : vector<16x32xf32>, vector<32x64xf32>, vector<16x64xf32> -> vector<16x64xf32>
    %7 = arith.addf %3, %6 : vector<16x64xf32>
    %c0_6 = arith.constant 0 : index
    %c0_7 = arith.constant 0 : index
    %8 = vector.load %arg7[%c0_6, %c0_7] : memref<16x64xf32, #tpu.memory_space<vmem>>, vector<16x64xf32>
    tpu.vector_store %arg7[%c0_6, %c0_7], %7 {strides = array<i32>} : memref<16x64xf32, #tpu.memory_space<vmem>>, vector<16x64xf32>,
    %c0_i32_8 = arith.constant 0 : i32
    %9 = arith.cmpi eq, %arg2, %c0_i32_8 : i32
    %10 = arith.extui %9 : i1 to i32
    %c0_i32_9 = arith.constant 0 : i32
    %11 = arith.cmpi ne, %10, %c0_i32_9 : i32
    scf.if %11 {
      %c0_10 = arith.constant 0 : index
      %c0_11 = arith.constant 0 : index
      %12 = vector.load %arg7[%c0_10, %c0_11] : memref<16x64xf32, #tpu.memory_space<vmem>>, vector<16x64xf32>
      %c0_12 = arith.constant 0 : index
      %c0_13 = arith.constant 0 : index
      %13 = vector.load %arg5[%c0_12, %c0_13] : memref<1x64xf32, #tpu.memory_space<vmem>>, vector<1x64xf32>
      %14 = vector.broadcast %13 : vector<1x64xf32> to vector<16x64xf32>
      %15 = arith.addf %12, %14 : vector<16x64xf32>
      %cst_14 = arith.constant 0.000000e+00 : f32
      %16 = vector.broadcast %cst_14 : f32 to vector<16x64xf32>
      %17 = arith.maximumf %15, %16 : vector<16x64xf32>
      %c0_15 = arith.constant 0 : index
      %c0_16 = arith.constant 0 : index
      %18 = vector.load %arg6[%c0_15, %c0_16] : memref<16x64xf32, #tpu.memory_space<vmem>>, vector<16x64xf32>
      tpu.vector_store %arg6[%c0_15, %c0_16], %17 {strides = array<i32>} : memref<16x64xf32, #tpu.memory_space<vmem>>, vector<16x64xf32>,
    } else {
    }
    return
  }
  func.func @transform_0(%arg0: i32, %arg1: i32, %arg2: i32) -> (i32, i32) {
    %c0_i32 = arith.constant 0 : i32
    return %arg0, %arg2 : i32, i32
  }
  func.func @transform_1(%arg0: i32, %arg1: i32, %arg2: i32) -> (i32, i32) {
    %c0_i32 = arith.constant 0 : i32
    return %arg2, %arg1 : i32, i32
  }
  func.func @transform_2(%arg0: i32, %arg1: i32, %arg2: i32) -> (i32, i32) {
    %c0_i32 = arith.constant 0 : i32
    %c0_i32_0 = arith.constant 0 : i32
    return %c0_i32, %arg1 : i32, i32
  }
  func.func @transform_3(%arg0: i32, %arg1: i32, %arg2: i32) -> (i32, i32) {
    %c0_i32 = arith.constant 0 : i32
    return %arg0, %arg1 : i32, i32
  }
}

module attributes {stable_mosaic.version = 11 : i64} {
  func.func @matmul_residual_ln_kernel(%arg0: i32, %arg1: i32, %arg2: memref<16x32xf32, #tpu.memory_space<vmem>>, %arg3: memref<32x32xf32, #tpu.memory_space<vmem>>, %arg4: memref<1x32xf32, #tpu.memory_space<vmem>>, %arg5: memref<16x32xf32, #tpu.memory_space<vmem>>, %arg6: memref<1x32xf32, #tpu.memory_space<vmem>>, %arg7: memref<1x32xf32, #tpu.memory_space<vmem>>, %arg8: memref<16x32xf32, #tpu.memory_space<vmem>>, %arg9: memref<16x32xf32, #tpu.memory_space<vmem>>) attributes {dimension_semantics = [#tpu.dimension_semantics<parallel>, #tpu.dimension_semantics<arbitrary>], iteration_bounds = array<i64: 1, 1>, scalar_prefetch = 0 : i64, scratch_operands = 1 : i64, tpu.core_type = #tpu.core_type<tc>, window_params = [{transform_indices = @transform_0, window_bounds = array<i64: 16, 32>}, {transform_indices = @transform_1, window_bounds = array<i64: 32, 32>}, {pipeline_mode = #tpu.pipeline_mode<synchronous>, transform_indices = @transform_2, window_bounds = array<i64: 1, 32>}, {transform_indices = @transform_3, window_bounds = array<i64: 16, 32>}, {pipeline_mode = #tpu.pipeline_mode<synchronous>, transform_indices = @transform_4, window_bounds = array<i64: 1, 32>}, {pipeline_mode = #tpu.pipeline_mode<synchronous>, transform_indices = @transform_5, window_bounds = array<i64: 1, 32>}, {transform_indices = @transform_6, window_bounds = array<i64: 16, 32>}]} {
    %c0_i32 = arith.constant 0 : i32
    %0 = arith.cmpi eq, %arg1, %c0_i32 : i32
    %1 = arith.extui %0 : i1 to i32
    %c0_i32_0 = arith.constant 0 : i32
    %2 = arith.cmpi ne, %1, %c0_i32_0 : i32
    scf.if %2 {
      %cst_10 = arith.constant 0.000000e+00 : f32
      %12 = vector.broadcast %cst_10 : f32 to vector<16x32xf32>
      %c0_11 = arith.constant 0 : index
      %c0_12 = arith.constant 0 : index
      %13 = vector.load %arg9[%c0_11, %c0_12] : memref<16x32xf32, #tpu.memory_space<vmem>>, vector<16x32xf32>
      tpu.vector_store %arg9[%c0_11, %c0_12], %12 {strides = array<i32>} : memref<16x32xf32, #tpu.memory_space<vmem>>, vector<16x32xf32>,
    } else {
    }
    %c0 = arith.constant 0 : index
    %c0_1 = arith.constant 0 : index
    %3 = vector.load %arg9[%c0, %c0_1] : memref<16x32xf32, #tpu.memory_space<vmem>>, vector<16x32xf32>
    %c0_2 = arith.constant 0 : index
    %c0_3 = arith.constant 0 : index
    %4 = vector.load %arg2[%c0_2, %c0_3] : memref<16x32xf32, #tpu.memory_space<vmem>>, vector<16x32xf32>
    %c0_4 = arith.constant 0 : index
    %c0_5 = arith.constant 0 : index
    %5 = vector.load %arg3[%c0_4, %c0_5] : memref<32x32xf32, #tpu.memory_space<vmem>>, vector<32x32xf32>
    %cst = arith.constant dense<0.000000e+00> : vector<16x32xf32>
    %6 = tpu.matmul %4, %5, %cst {dimension_numbers = #tpu.dot_dimension_numbers<[1], [0], [0], [1], [0, 0, 1, 1], [], []>} : vector<16x32xf32>, vector<32x32xf32>, vector<16x32xf32> -> vector<16x32xf32>
    %7 = arith.addf %3, %6 : vector<16x32xf32>
    %c0_6 = arith.constant 0 : index
    %c0_7 = arith.constant 0 : index
    %8 = vector.load %arg9[%c0_6, %c0_7] : memref<16x32xf32, #tpu.memory_space<vmem>>, vector<16x32xf32>
    tpu.vector_store %arg9[%c0_6, %c0_7], %7 {strides = array<i32>} : memref<16x32xf32, #tpu.memory_space<vmem>>, vector<16x32xf32>,
    %c0_i32_8 = arith.constant 0 : i32
    %9 = arith.cmpi eq, %arg1, %c0_i32_8 : i32
    %10 = arith.extui %9 : i1 to i32
    %c0_i32_9 = arith.constant 0 : i32
    %11 = arith.cmpi ne, %10, %c0_i32_9 : i32
    scf.if %11 {
      %c0_10 = arith.constant 0 : index
      %c0_11 = arith.constant 0 : index
      %12 = vector.load %arg5[%c0_10, %c0_11] : memref<16x32xf32, #tpu.memory_space<vmem>>, vector<16x32xf32>
      %c0_12 = arith.constant 0 : index
      %c0_13 = arith.constant 0 : index
      %13 = vector.load %arg9[%c0_12, %c0_13] : memref<16x32xf32, #tpu.memory_space<vmem>>, vector<16x32xf32>
      %14 = arith.addf %12, %13 : vector<16x32xf32>
      %c0_14 = arith.constant 0 : index
      %c0_15 = arith.constant 0 : index
      %15 = vector.load %arg4[%c0_14, %c0_15] : memref<1x32xf32, #tpu.memory_space<vmem>>, vector<1x32xf32>
      %16 = vector.broadcast %15 : vector<1x32xf32> to vector<16x32xf32>
      %17 = arith.addf %14, %16 : vector<16x32xf32>
      %cst_16 = arith.constant dense<0.000000e+00> : vector<16xf32>
      %18 = vector.multi_reduction <add>, %17, %cst_16 [1] : vector<16x32xf32> to vector<16xf32>
      %19 = vector.shape_cast %18 : vector<16xf32> to vector<16x1xf32>
      %cst_17 = arith.constant 3.200000e+01 : f32
      %20 = vector.broadcast %cst_17 : f32 to vector<16x1xf32>
      %21 = arith.divf %19, %20 : vector<16x1xf32>
      %22 = vector.broadcast %21 : vector<16x1xf32> to vector<16x32xf32>
      %23 = arith.subf %17, %22 : vector<16x32xf32>
      %24 = arith.mulf %23, %23 : vector<16x32xf32>
      %cst_18 = arith.constant dense<0.000000e+00> : vector<16xf32>
      %25 = vector.multi_reduction <add>, %24, %cst_18 [1] : vector<16x32xf32> to vector<16xf32>
      %26 = vector.shape_cast %25 : vector<16xf32> to vector<16x1xf32>
      %cst_19 = arith.constant 3.200000e+01 : f32
      %27 = vector.broadcast %cst_19 : f32 to vector<16x1xf32>
      %28 = arith.divf %26, %27 : vector<16x1xf32>
      %cst_20 = arith.constant 9.99999974E-6 : f32
      %29 = vector.broadcast %cst_20 : f32 to vector<16x1xf32>
      %30 = arith.addf %28, %29 : vector<16x1xf32>
      %31 = math.rsqrt %30 : vector<16x1xf32>
      %32 = vector.broadcast %31 : vector<16x1xf32> to vector<16x32xf32>
      %33 = arith.mulf %23, %32 : vector<16x32xf32>
      %c0_21 = arith.constant 0 : index
      %c0_22 = arith.constant 0 : index
      %34 = vector.load %arg6[%c0_21, %c0_22] : memref<1x32xf32, #tpu.memory_space<vmem>>, vector<1x32xf32>
      %35 = vector.broadcast %34 : vector<1x32xf32> to vector<16x32xf32>
      %36 = arith.mulf %33, %35 : vector<16x32xf32>
      %c0_23 = arith.constant 0 : index
      %c0_24 = arith.constant 0 : index
      %37 = vector.load %arg7[%c0_23, %c0_24] : memref<1x32xf32, #tpu.memory_space<vmem>>, vector<1x32xf32>
      %38 = vector.broadcast %37 : vector<1x32xf32> to vector<16x32xf32>
      %39 = arith.addf %36, %38 : vector<16x32xf32>
      %c0_25 = arith.constant 0 : index
      %c0_26 = arith.constant 0 : index
      %40 = vector.load %arg8[%c0_25, %c0_26] : memref<16x32xf32, #tpu.memory_space<vmem>>, vector<16x32xf32>
      tpu.vector_store %arg8[%c0_25, %c0_26], %39 {strides = array<i32>} : memref<16x32xf32, #tpu.memory_space<vmem>>, vector<16x32xf32>,
    } else {
    }
    return
  }
  func.func @transform_0(%arg0: i32, %arg1: i32) -> (i32, i32) {
    %c0_i32 = arith.constant 0 : i32
    return %arg0, %arg1 : i32, i32
  }
  func.func @transform_1(%arg0: i32, %arg1: i32) -> (i32, i32) {
    %c0_i32 = arith.constant 0 : i32
    %c0_i32_0 = arith.constant 0 : i32
    return %arg1, %c0_i32 : i32, i32
  }
  func.func @transform_2(%arg0: i32, %arg1: i32) -> (i32, i32) {
    %c0_i32 = arith.constant 0 : i32
    %c0_i32_0 = arith.constant 0 : i32
    %c0_i32_1 = arith.constant 0 : i32
    return %c0_i32, %c0_i32_0 : i32, i32
  }
  func.func @transform_3(%arg0: i32, %arg1: i32) -> (i32, i32) {
    %c0_i32 = arith.constant 0 : i32
    %c0_i32_0 = arith.constant 0 : i32
    return %arg0, %c0_i32 : i32, i32
  }
  func.func @transform_4(%arg0: i32, %arg1: i32) -> (i32, i32) {
    %c0_i32 = arith.constant 0 : i32
    %c0_i32_0 = arith.constant 0 : i32
    %c0_i32_1 = arith.constant 0 : i32
    return %c0_i32, %c0_i32_0 : i32, i32
  }
  func.func @transform_5(%arg0: i32, %arg1: i32) -> (i32, i32) {
    %c0_i32 = arith.constant 0 : i32
    %c0_i32_0 = arith.constant 0 : i32
    %c0_i32_1 = arith.constant 0 : i32
    return %c0_i32, %c0_i32_0 : i32, i32
  }
  func.func @transform_6(%arg0: i32, %arg1: i32) -> (i32, i32) {
    %c0_i32 = arith.constant 0 : i32
    %c0_i32_0 = arith.constant 0 : i32
    return %arg0, %c0_i32 : i32, i32
  }
}

module attributes {stable_mosaic.version = 11 : i64} {
  func.func @matmul_bias_kernel(%arg0: i32, %arg1: i32, %arg2: i32, %arg3: memref<16x32xf32, #tpu.memory_space<vmem>>, %arg4: memref<32x64xf32, #tpu.memory_space<vmem>>, %arg5: memref<1x64xf32, #tpu.memory_space<vmem>>, %arg6: memref<16x64xf32, #tpu.memory_space<vmem>>, %arg7: memref<16x64xf32, #tpu.memory_space<vmem>>) attributes {dimension_semantics = [#tpu.dimension_semantics<parallel>, #tpu.dimension_semantics<parallel>, #tpu.dimension_semantics<arbitrary>], iteration_bounds = array<i64: 1, 1, 1>, scalar_prefetch = 0 : i64, scratch_operands = 1 : i64, tpu.core_type = #tpu.core_type<tc>, window_params = [{transform_indices = @transform_0, window_bounds = array<i64: 16, 32>}, {transform_indices = @transform_1, window_bounds = array<i64: 32, 64>}, {transform_indices = @transform_2, window_bounds = array<i64: 1, 64>}, {transform_indices = @transform_3, window_bounds = array<i64: 16, 64>}]} {
    %c0_i32 = arith.constant 0 : i32
    %0 = arith.cmpi eq, %arg2, %c0_i32 : i32
    %1 = arith.extui %0 : i1 to i32
    %c0_i32_0 = arith.constant 0 : i32
    %2 = arith.cmpi ne, %1, %c0_i32_0 : i32
    scf.if %2 {
      %cst_10 = arith.constant 0.000000e+00 : f32
      %12 = vector.broadcast %cst_10 : f32 to vector<16x64xf32>
      %c0_11 = arith.constant 0 : index
      %c0_12 = arith.constant 0 : index
      %13 = vector.load %arg7[%c0_11, %c0_12] : memref<16x64xf32, #tpu.memory_space<vmem>>, vector<16x64xf32>
      tpu.vector_store %arg7[%c0_11, %c0_12], %12 {strides = array<i32>} : memref<16x64xf32, #tpu.memory_space<vmem>>, vector<16x64xf32>,
    } else {
    }
    %c0 = arith.constant 0 : index
    %c0_1 = arith.constant 0 : index
    %3 = vector.load %arg7[%c0, %c0_1] : memref<16x64xf32, #tpu.memory_space<vmem>>, vector<16x64xf32>
    %c0_2 = arith.constant 0 : index
    %c0_3 = arith.constant 0 : index
    %4 = vector.load %arg3[%c0_2, %c0_3] : memref<16x32xf32, #tpu.memory_space<vmem>>, vector<16x32xf32>
    %c0_4 = arith.constant 0 : index
    %c0_5 = arith.constant 0 : index
    %5 = vector.load %arg4[%c0_4, %c0_5] : memref<32x64xf32, #tpu.memory_space<vmem>>, vector<32x64xf32>
    %cst = arith.constant dense<0.000000e+00> : vector<16x64xf32>
    %6 = tpu.matmul %4, %5, %cst {dimension_numbers = #tpu.dot_dimension_numbers<[1], [0], [0], [1], [0, 0, 1, 1], [], []>} : vector<16x32xf32>, vector<32x64xf32>, vector<16x64xf32> -> vector<16x64xf32>
    %7 = arith.addf %3, %6 : vector<16x64xf32>
    %c0_6 = arith.constant 0 : index
    %c0_7 = arith.constant 0 : index
    %8 = vector.load %arg7[%c0_6, %c0_7] : memref<16x64xf32, #tpu.memory_space<vmem>>, vector<16x64xf32>
    tpu.vector_store %arg7[%c0_6, %c0_7], %7 {strides = array<i32>} : memref<16x64xf32, #tpu.memory_space<vmem>>, vector<16x64xf32>,
    %c0_i32_8 = arith.constant 0 : i32
    %9 = arith.cmpi eq, %arg2, %c0_i32_8 : i32
    %10 = arith.extui %9 : i1 to i32
    %c0_i32_9 = arith.constant 0 : i32
    %11 = arith.cmpi ne, %10, %c0_i32_9 : i32
    scf.if %11 {
      %c0_10 = arith.constant 0 : index
      %c0_11 = arith.constant 0 : index
      %12 = vector.load %arg7[%c0_10, %c0_11] : memref<16x64xf32, #tpu.memory_space<vmem>>, vector<16x64xf32>
      %c0_12 = arith.constant 0 : index
      %c0_13 = arith.constant 0 : index
      %13 = vector.load %arg5[%c0_12, %c0_13] : memref<1x64xf32, #tpu.memory_space<vmem>>, vector<1x64xf32>
      %14 = vector.broadcast %13 : vector<1x64xf32> to vector<16x64xf32>
      %15 = arith.addf %12, %14 : vector<16x64xf32>
      %c0_14 = arith.constant 0 : index
      %c0_15 = arith.constant 0 : index
      %16 = vector.load %arg6[%c0_14, %c0_15] : memref<16x64xf32, #tpu.memory_space<vmem>>, vector<16x64xf32>
      tpu.vector_store %arg6[%c0_14, %c0_15], %15 {strides = array<i32>} : memref<16x64xf32, #tpu.memory_space<vmem>>, vector<16x64xf32>,
    } else {
    }
    return
  }
  func.func @transform_0(%arg0: i32, %arg1: i32, %arg2: i32) -> (i32, i32) {
    %c0_i32 = arith.constant 0 : i32
    return %arg0, %arg2 : i32, i32
  }
  func.func @transform_1(%arg0: i32, %arg1: i32, %arg2: i32) -> (i32, i32) {
    %c0_i32 = arith.constant 0 : i32
    return %arg2, %arg1 : i32, i32
  }
  func.func @transform_2(%arg0: i32, %arg1: i32, %arg2: i32) -> (i32, i32) {
    %c0_i32 = arith.constant 0 : i32
    %c0_i32_0 = arith.constant 0 : i32
    return %c0_i32, %arg1 : i32, i32
  }
  func.func @transform_3(%arg0: i32, %arg1: i32, %arg2: i32) -> (i32, i32) {
    %c0_i32 = arith.constant 0 : i32
    return %arg0, %arg1 : i32, i32
  }
}

module attributes {stable_mosaic.version = 11 : i64} {
  func.func @matmul_residual_ln_kernel(%arg0: i32, %arg1: i32, %arg2: memref<16x64xf32, #tpu.memory_space<vmem>>, %arg3: memref<64x32xf32, #tpu.memory_space<vmem>>, %arg4: memref<1x32xf32, #tpu.memory_space<vmem>>, %arg5: memref<16x32xf32, #tpu.memory_space<vmem>>, %arg6: memref<1x32xf32, #tpu.memory_space<vmem>>, %arg7: memref<1x32xf32, #tpu.memory_space<vmem>>, %arg8: memref<16x32xf32, #tpu.memory_space<vmem>>, %arg9: memref<16x32xf32, #tpu.memory_space<vmem>>) attributes {dimension_semantics = [#tpu.dimension_semantics<parallel>, #tpu.dimension_semantics<arbitrary>], iteration_bounds = array<i64: 1, 1>, scalar_prefetch = 0 : i64, scratch_operands = 1 : i64, tpu.core_type = #tpu.core_type<tc>, window_params = [{transform_indices = @transform_0, window_bounds = array<i64: 16, 64>}, {transform_indices = @transform_1, window_bounds = array<i64: 64, 32>}, {pipeline_mode = #tpu.pipeline_mode<synchronous>, transform_indices = @transform_2, window_bounds = array<i64: 1, 32>}, {transform_indices = @transform_3, window_bounds = array<i64: 16, 32>}, {pipeline_mode = #tpu.pipeline_mode<synchronous>, transform_indices = @transform_4, window_bounds = array<i64: 1, 32>}, {pipeline_mode = #tpu.pipeline_mode<synchronous>, transform_indices = @transform_5, window_bounds = array<i64: 1, 32>}, {transform_indices = @transform_6, window_bounds = array<i64: 16, 32>}]} {
    %c0_i32 = arith.constant 0 : i32
    %0 = arith.cmpi eq, %arg1, %c0_i32 : i32
    %1 = arith.extui %0 : i1 to i32
    %c0_i32_0 = arith.constant 0 : i32
    %2 = arith.cmpi ne, %1, %c0_i32_0 : i32
    scf.if %2 {
      %cst_10 = arith.constant 0.000000e+00 : f32
      %12 = vector.broadcast %cst_10 : f32 to vector<16x32xf32>
      %c0_11 = arith.constant 0 : index
      %c0_12 = arith.constant 0 : index
      %13 = vector.load %arg9[%c0_11, %c0_12] : memref<16x32xf32, #tpu.memory_space<vmem>>, vector<16x32xf32>
      tpu.vector_store %arg9[%c0_11, %c0_12], %12 {strides = array<i32>} : memref<16x32xf32, #tpu.memory_space<vmem>>, vector<16x32xf32>,
    } else {
    }
    %c0 = arith.constant 0 : index
    %c0_1 = arith.constant 0 : index
    %3 = vector.load %arg9[%c0, %c0_1] : memref<16x32xf32, #tpu.memory_space<vmem>>, vector<16x32xf32>
    %c0_2 = arith.constant 0 : index
    %c0_3 = arith.constant 0 : index
    %4 = vector.load %arg2[%c0_2, %c0_3] : memref<16x64xf32, #tpu.memory_space<vmem>>, vector<16x64xf32>
    %c0_4 = arith.constant 0 : index
    %c0_5 = arith.constant 0 : index
    %5 = vector.load %arg3[%c0_4, %c0_5] : memref<64x32xf32, #tpu.memory_space<vmem>>, vector<64x32xf32>
    %cst = arith.constant dense<0.000000e+00> : vector<16x32xf32>
    %6 = tpu.matmul %4, %5, %cst {dimension_numbers = #tpu.dot_dimension_numbers<[1], [0], [0], [1], [0, 0, 1, 1], [], []>} : vector<16x64xf32>, vector<64x32xf32>, vector<16x32xf32> -> vector<16x32xf32>
    %7 = arith.addf %3, %6 : vector<16x32xf32>
    %c0_6 = arith.constant 0 : index
    %c0_7 = arith.constant 0 : index
    %8 = vector.load %arg9[%c0_6, %c0_7] : memref<16x32xf32, #tpu.memory_space<vmem>>, vector<16x32xf32>
    tpu.vector_store %arg9[%c0_6, %c0_7], %7 {strides = array<i32>} : memref<16x32xf32, #tpu.memory_space<vmem>>, vector<16x32xf32>,
    %c0_i32_8 = arith.constant 0 : i32
    %9 = arith.cmpi eq, %arg1, %c0_i32_8 : i32
    %10 = arith.extui %9 : i1 to i32
    %c0_i32_9 = arith.constant 0 : i32
    %11 = arith.cmpi ne, %10, %c0_i32_9 : i32
    scf.if %11 {
      %c0_10 = arith.constant 0 : index
      %c0_11 = arith.constant 0 : index
      %12 = vector.load %arg5[%c0_10, %c0_11] : memref<16x32xf32, #tpu.memory_space<vmem>>, vector<16x32xf32>
      %c0_12 = arith.constant 0 : index
      %c0_13 = arith.constant 0 : index
      %13 = vector.load %arg9[%c0_12, %c0_13] : memref<16x32xf32, #tpu.memory_space<vmem>>, vector<16x32xf32>
      %14 = arith.addf %12, %13 : vector<16x32xf32>
      %c0_14 = arith.constant 0 : index
      %c0_15 = arith.constant 0 : index
      %15 = vector.load %arg4[%c0_14, %c0_15] : memref<1x32xf32, #tpu.memory_space<vmem>>, vector<1x32xf32>
      %16 = vector.broadcast %15 : vector<1x32xf32> to vector<16x32xf32>
      %17 = arith.addf %14, %16 : vector<16x32xf32>
      %cst_16 = arith.constant dense<0.000000e+00> : vector<16xf32>
      %18 = vector.multi_reduction <add>, %17, %cst_16 [1] : vector<16x32xf32> to vector<16xf32>
      %19 = vector.shape_cast %18 : vector<16xf32> to vector<16x1xf32>
      %cst_17 = arith.constant 3.200000e+01 : f32
      %20 = vector.broadcast %cst_17 : f32 to vector<16x1xf32>
      %21 = arith.divf %19, %20 : vector<16x1xf32>
      %22 = vector.broadcast %21 : vector<16x1xf32> to vector<16x32xf32>
      %23 = arith.subf %17, %22 : vector<16x32xf32>
      %24 = arith.mulf %23, %23 : vector<16x32xf32>
      %cst_18 = arith.constant dense<0.000000e+00> : vector<16xf32>
      %25 = vector.multi_reduction <add>, %24, %cst_18 [1] : vector<16x32xf32> to vector<16xf32>
      %26 = vector.shape_cast %25 : vector<16xf32> to vector<16x1xf32>
      %cst_19 = arith.constant 3.200000e+01 : f32
      %27 = vector.broadcast %cst_19 : f32 to vector<16x1xf32>
      %28 = arith.divf %26, %27 : vector<16x1xf32>
      %cst_20 = arith.constant 9.99999974E-6 : f32
      %29 = vector.broadcast %cst_20 : f32 to vector<16x1xf32>
      %30 = arith.addf %28, %29 : vector<16x1xf32>
      %31 = math.rsqrt %30 : vector<16x1xf32>
      %32 = vector.broadcast %31 : vector<16x1xf32> to vector<16x32xf32>
      %33 = arith.mulf %23, %32 : vector<16x32xf32>
      %c0_21 = arith.constant 0 : index
      %c0_22 = arith.constant 0 : index
      %34 = vector.load %arg6[%c0_21, %c0_22] : memref<1x32xf32, #tpu.memory_space<vmem>>, vector<1x32xf32>
      %35 = vector.broadcast %34 : vector<1x32xf32> to vector<16x32xf32>
      %36 = arith.mulf %33, %35 : vector<16x32xf32>
      %c0_23 = arith.constant 0 : index
      %c0_24 = arith.constant 0 : index
      %37 = vector.load %arg7[%c0_23, %c0_24] : memref<1x32xf32, #tpu.memory_space<vmem>>, vector<1x32xf32>
      %38 = vector.broadcast %37 : vector<1x32xf32> to vector<16x32xf32>
      %39 = arith.addf %36, %38 : vector<16x32xf32>
      %c0_25 = arith.constant 0 : index
      %c0_26 = arith.constant 0 : index
      %40 = vector.load %arg8[%c0_25, %c0_26] : memref<16x32xf32, #tpu.memory_space<vmem>>, vector<16x32xf32>
      tpu.vector_store %arg8[%c0_25, %c0_26], %39 {strides = array<i32>} : memref<16x32xf32, #tpu.memory_space<vmem>>, vector<16x32xf32>,
    } else {
    }
    return
  }
  func.func @transform_0(%arg0: i32, %arg1: i32) -> (i32, i32) {
    %c0_i32 = arith.constant 0 : i32
    return %arg0, %arg1 : i32, i32
  }
  func.func @transform_1(%arg0: i32, %arg1: i32) -> (i32, i32) {
    %c0_i32 = arith.constant 0 : i32
    %c0_i32_0 = arith.constant 0 : i32
    return %arg1, %c0_i32 : i32, i32
  }
  func.func @transform_2(%arg0: i32, %arg1: i32) -> (i32, i32) {
    %c0_i32 = arith.constant 0 : i32
    %c0_i32_0 = arith.constant 0 : i32
    %c0_i32_1 = arith.constant 0 : i32
    return %c0_i32, %c0_i32_0 : i32, i32
  }
  func.func @transform_3(%arg0: i32, %arg1: i32) -> (i32, i32) {
    %c0_i32 = arith.constant 0 : i32
    %c0_i32_0 = arith.constant 0 : i32
    return %arg0, %c0_i32 : i32, i32
  }
  func.func @transform_4(%arg0: i32, %arg1: i32) -> (i32, i32) {
    %c0_i32 = arith.constant 0 : i32
    %c0_i32_0 = arith.constant 0 : i32
    %c0_i32_1 = arith.constant 0 : i32
    return %c0_i32, %c0_i32_0 : i32, i32
  }
  func.func @transform_5(%arg0: i32, %arg1: i32) -> (i32, i32) {
    %c0_i32 = arith.constant 0 : i32
    %c0_i32_0 = arith.constant 0 : i32
    %c0_i32_1 = arith.constant 0 : i32
    return %c0_i32, %c0_i32_0 : i32, i32
  }
  func.func @transform_6(%arg0: i32, %arg1: i32) -> (i32, i32) {
    %c0_i32 = arith.constant 0 : i32
    %c0_i32_0 = arith.constant 0 : i32
    return %arg0, %c0_i32 : i32, i32
  }
}

</mosaic_0001>

<bundles_post_ra>
// kernel: transformer_forward.14
= control target key start
LH: loop header
LB: loop body
LE: loop exit
PB: predicated region body
PF: predicated region fallthrough
CT: control target
= control target key end

     0   :  { %vm29_vm0 = vcmask 261120   ;;  %vm18_vm1 = vcmask 523264   ;;  %v167_v3 = vmov 0.0   ;;  %s223_s1 = inlined_call_operand.vmem [shape: f32[32,64], index: 1, kind: input, shape index: {}]   ;;  %s224_s0 = inlined_call_operand.vmem [shape: f32[16,32], index: 0, kind: input, shape index: {}]   ;;  %s225_s2 = inlined_call_operand.vmem [shape: f32[1,64], index: 2, kind: input, shape index: {}]   ;;  %s226_s3 = inlined_call_operand.vmem [shape: f32[16,64], index: 3, kind: output, shape index: {}]  }
   0x1   :  { %v25_v0 = vld [vmem:[%s223_s1] sm:$0xff]  ;;  %v26_v1 = vld [vmem:[%s223_s1 + $0x8] sm:$0xff]  ;;  %v27_v2 = vld [vmem:[%s223_s1 + $0x10] sm:$0xff]  ;;  %20 = vst.msk [vmem:[#allocation2 + $0x8] sm:$0xff] %vm18_vm1, %v167_v3 }
   0x2   :  { %19 = vst.msk [vmem:[#allocation2] sm:$0xff] %vm18_vm1, %v167_v3  ;;  %v158_v4 = vpack.c.bf16 %v26_v1, %v25_v0  ;;  %v28_v5 = vld [vmem:[%s223_s1 + $0x18] sm:$0xff]  ;;  %v23_v6 = vld [vmem:[%s224_s0] sm:$0xff]  ;;  %v24_v8 = vld [vmem:[%s224_s0 + $0x8] sm:$0xff] }
   0x3   :  { %v162_v7 = vpack.c.bf16 %v28_v5, %v27_v2  ;;  %155 = vmatprep.mubr.msk.f32.mxu0 %vm29_vm0, %v23_v6  ;;  %v140_v15 = vld [vmem:[%s225_s2] ss:$0 sm:$0xff] }
   0x4   :  { %159 = vmatprep.subr.bf16.mxu0 %v158_v4 }
   0x5   :  { %161 = vmatpush3.bf16.msra.mxu0 %v158_v4 }
   0x6   :  { %163 = vmatprep.subr.bf16.mxu0 %v162_v7 }
   0x8   :  { %v22_v9 = vld [vmem:[#allocation2 + $0x8] sm:$0xff] }
   0x9   :  { %165 = vmatpush3.bf16.msra.mxu0 %v162_v7  ;;  %v21_v10 = vld [vmem:[#allocation2] sm:$0xff] }
   0xc   :  { %156 = vmatmul.mubr.msk.f32.vlgmr.msra.gmra.mrb[0].mxu0 %vm29_vm0, %v24_v8 }
  0xdf   :  { %v157_v11 = vpop.f32.mrb[0].mxu0 }
  0xe0   :  { %v112_v12 = vadd.f32 %v157_v11, %v22_v9  ;;  %v102_v13 = vpop.f32.mrb[1].mxu0 }
  0xe1   :  { %v111_v14 = vadd.f32 %v102_v13, %v21_v10 }
  0xe2   :  { %115 = vst.msk [vmem:[#allocation2 + $0x8] sm:$0xff] %vm18_vm1, %v112_v12 }
  0xe3   :  { %114 = vst.msk [vmem:[#allocation2] sm:$0xff] %vm18_vm1, %v111_v14 }
  0xe9   :  { %v120_v16 = vld [vmem:[#allocation2 + $0x8] sm:$0xff] }
  0xea   :  { %v129_v17 = vadd.f32 %v140_v15, %v120_v16  ;;  %v119_v18 = vld [vmem:[#allocation2] sm:$0xff] }
  0xeb   :  { %v128_v19 = vadd.f32 %v140_v15, %v119_v18 }
  0xec   :  { %v131_v20 = vmax.f32 %v129_v17, 0.0 }
  0xed   :  { %v130_v21 = vmax.f32 %v128_v19, 0.0 }
  0xee   :  { %133 = vst.msk [vmem:[%s226_s3 + $0x8] sm:$0xff] %vm18_vm1, %v131_v20 }
  0xef   :  { %132 = vst.msk [vmem:[%s226_s3] sm:$0xff] %vm18_vm1, %v130_v21 }

// kernel: transformer_forward.11
= control target key start
LH: loop header
LB: loop body
LE: loop exit
PB: predicated region body
PF: predicated region fallthrough
CT: control target
= control target key end

     0   :  { %vm29_vm0 = vcmask 261120   ;;  %vm18_vm1 = vcmask 785408   ;;  %v165_v3 = vmov 0.0   ;;  %s221_s1 = inlined_call_operand.vmem [shape: f32[32,96], index: 1, kind: input, shape index: {}]   ;;  %s222_s0 = inlined_call_operand.vmem [shape: f32[16,32], index: 0, kind: input, shape index: {}]   ;;  %s223_s2 = inlined_call_operand.vmem [shape: f32[1,96], index: 2, kind: input, shape index: {}]   ;;  %s224_s3 = inlined_call_operand.vmem [shape: f32[16,96], index: 3, kind: output, shape index: {}]  }
   0x1   :  { %v25_v0 = vld [vmem:[%s221_s1] sm:$0xff]  ;;  %v26_v1 = vld [vmem:[%s221_s1 + $0x8] sm:$0xff]  ;;  %v27_v2 = vld [vmem:[%s221_s1 + $0x10] sm:$0xff]  ;;  %20 = vst.msk [vmem:[#allocation2 + $0x8] sm:$0xff] %vm18_vm1, %v165_v3 }
   0x2   :  { %19 = vst.msk [vmem:[#allocation2] sm:$0xff] %vm18_vm1, %v165_v3  ;;  %v156_v4 = vpack.c.bf16 %v26_v1, %v25_v0  ;;  %v28_v5 = vld [vmem:[%s221_s1 + $0x18] sm:$0xff]  ;;  %v23_v6 = vld [vmem:[%s222_s0] sm:$0xff]  ;;  %v24_v8 = vld [vmem:[%s222_s0 + $0x8] sm:$0xff] }
   0x3   :  { %v160_v7 = vpack.c.bf16 %v28_v5, %v27_v2  ;;  %153 = vmatprep.mubr.msk.f32.mxu0 %vm29_vm0, %v23_v6  ;;  %v138_v15 = vld [vmem:[%s223_s2] ss:$0 sm:$0xff] }
   0x4   :  { %157 = vmatprep.subr.bf16.mxu0 %v156_v4 }
   0x5   :  { %159 = vmatpush3.bf16.msra.mxu0 %v156_v4 }
   0x6   :  { %161 = vmatprep.subr.bf16.mxu0 %v160_v7 }
   0x8   :  { %v22_v9 = vld [vmem:[#allocation2 + $0x8] sm:$0xff] }
   0x9   :  { %163 = vmatpush3.bf16.msra.mxu0 %v160_v7  ;;  %v21_v10 = vld [vmem:[#allocation2] sm:$0xff] }
   0xc   :  { %154 = vmatmul.mubr.msk.f32.vlgmr.msra.gmra.mrb[0].mxu0 %vm29_vm0, %v24_v8 }
  0xdf   :  { %v155_v11 = vpop.f32.mrb[0].mxu0 }
  0xe0   :  { %v112_v12 = vadd.f32 %v155_v11, %v22_v9  ;;  %v102_v13 = vpop.f32.mrb[1].mxu0 }
  0xe1   :  { %v111_v14 = vadd.f32 %v102_v13, %v21_v10 }
  0xe2   :  { %115 = vst.msk [vmem:[#allocation2 + $0x8] sm:$0xff] %vm18_vm1, %v112_v12 }
  0xe3   :  { %114 = vst.msk [vmem:[#allocation2] sm:$0xff] %vm18_vm1, %v111_v14 }
  0xe9   :  { %v120_v16 = vld [vmem:[#allocation2 + $0x8] sm:$0xff] }
  0xea   :  { %v129_v17 = vadd.f32 %v138_v15, %v120_v16  ;;  %v119_v18 = vld [vmem:[#allocation2] sm:$0xff] }
  0xeb   :  { %v128_v19 = vadd.f32 %v138_v15, %v119_v18 }
  0xec   :  { %131 = vst.msk [vmem:[%s224_s3 + $0x8] sm:$0xff] %vm18_vm1, %v129_v17 }
  0xed   :  { %130 = vst.msk [vmem:[%s224_s3] sm:$0xff] %vm18_vm1, %v128_v19 }

// kernel: transformer_forward.12
= control target key start
LH: loop header
LB: loop body
LE: loop exit
PB: predicated region body
PF: predicated region fallthrough
CT: control target
= control target key end

     0   :  { %s1094_s12 = smov 0   ;;  %s1171_s0 = inlined_call_operand.vmem [shape: f32[2,4,8,8], index: 0, kind: input, shape index: {}]   ;;  %s1172_s1 = inlined_call_operand.vmem [shape: f32[2,4,8,8], index: 1, kind: input, shape index: {}]   ;;  %s1173_s2 = inlined_call_operand.vmem [shape: f32[2,4,8,8], index: 2, kind: input, shape index: {}]   ;;  %s1174_s3 = inlined_call_operand.vmem [shape: f32[2,4,8,8], index: 3, kind: output, shape index: {}]  }
   0x1 LB: > { %s951_s13 = sadd.s32 4294967295, %s1070_s12   ;;  %p955_p0 = scmp.ge.s32.totalorder %s1070_s12, 1  ;;  %s1070_s12 = sphi %s1094_s12, %s13_s12  }
   0x2   : > { %p157_p1 = scmp.lt.s32.totalorder %s1070_s12, 3 }
   0x4   : > { %p158_p2 = pnand %p955_p0, %p157_p1 }
   0x5   : > { %p191_p3 = scmp.lt.s32.totalorder (!%p158_p2), %s951_s13, 1  ;;  %v1072_v0 = vmov (!%p158_p2), 0.0   ;;  %vm1073_vm0 = vmmov (!%p158_p2), 0   ;;  %vm219_vm1 = vcmask (!%p158_p2), 64512  }
   0x6   : > { %161 = sbr.rel (%p158_p2) target bundleno = 769 (0x301), region = 32  ;;  %998 = vmatprep.subr.mxu0 (!%p158_p2), %v1072_v0  ;;  %1000 = vmatprep.mubr.msk.f32.mxu0 (!%p158_p2), %vm1073_vm0, %v1072_v0 }
   0x7   : > { %1003 = vmatprep.subr.mxu1 (!%p158_p2), %v1072_v0  ;;  %1005 = vmatprep.mubr.msk.f32.mxu1 (!%p158_p2), %vm1073_vm0, %v1072_v0 }
   0xd   : > { %s1176_s13 = smov (!%p191_p3, %s951_s13), 1 }
   0xe   : > { %s1108_s14 = sshll.u32 %s1176_s13, 5 }
   0xf   : > { %s200_s17 = scalar_lea.vmem %s1172_s1, %s1108_s14  ;;  %s195_s20 = scalar_lea.vmem %s1171_s0, %s1108_s14 }
  0x10   : > { %v215_v1 = vld [vmem:[%s200_s17] sm:$0xff]  ;;  %v216_v2 = vld [vmem:[%s200_s17 + $0x8] sm:$0xff]  ;;  %v217_v5 = vld [vmem:[%s200_s17 + $0x10] sm:$0xff]  ;;  %s205_s23 = scalar_lea.vmem %s1173_s2, %s1108_s14  ;;  %s210_s26 = scalar_lea.vmem %s1174_s3, %s1108_s14 }
  0x11   : > { %999 = vmatpush3.xpose.msk.msra.mxu0 %vm219_vm1, %v215_v1  ;;  %v211_v3 = vld [vmem:[%s195_s20] sm:$0xff]  ;;  %1004 = vmatpush3.xpose.msk.msra.mxu1 %vm219_vm1, %v216_v2  ;;  %v212_v4 = vld [vmem:[%s195_s20 + $0x8] sm:$0xff]  ;;  %v218_v6 = vld [vmem:[%s200_s17 + $0x18] sm:$0xff] }
  0x12   : > { %1008 = vmatprep.subr.mxu0 %v1072_v0  ;;  %1013 = vmatprep.subr.mxu1 %v1072_v0  ;;  %v213_v7 = vld [vmem:[%s195_s20 + $0x10] sm:$0xff]  ;;  %v214_v8 = vld [vmem:[%s195_s20 + $0x18] sm:$0xff]  ;;  %v572_v45 = vld [vmem:[%s205_s23] sm:$0xff] }
  0x13   : > { %v573_v46 = vld [vmem:[%s205_s23 + $0x8] sm:$0xff]  ;;  %v574_v53 = vld [vmem:[%s205_s23 + $0x10] sm:$0xff]  ;;  %v575_v57 = vld [vmem:[%s205_s23 + $0x18] sm:$0xff] }
  0x14   : > { %1001 = vmatmul.mubr.msk.f32.vlgmr.msra.gmra.mrb[0].mxu0 %vm219_vm1, %v211_v3  ;;  %1006 = vmatmul.mubr.msk.f32.vlgmr.msra.gmra.mrb[0].mxu1 %vm219_vm1, %v212_v4 }
  0x15   : > { %1009 = vmatpush3.xpose.msk.msra.mxu0 %vm219_vm1, %v217_v5  ;;  %1010 = vmatprep.mubr.msk.f32.mxu0 %vm1073_vm0, %v1072_v0 }
  0x16   : > { %1014 = vmatpush3.xpose.msk.msra.mxu1 %vm219_vm1, %v218_v6  ;;  %1015 = vmatprep.mubr.msk.f32.mxu1 %vm1073_vm0, %v1072_v0 }
  0x17   : > { %1018 = vmatprep.subr.mxu0 %v1072_v0  ;;  %1023 = vmatprep.subr.mxu1 %v1072_v0 }
  0x18   : > { %1011 = vmatmul.mubr.msk.f32.vlgmr.msra.gmra.mrb[2].mxu0 %vm219_vm1, %v213_v7 }
  0x19   : > { %1016 = vmatmul.mubr.msk.f32.vlgmr.msra.gmra.mrb[2].mxu1 %vm219_vm1, %v214_v8  ;;  %1020 = vmatprep.mubr.msk.f32.mxu0 %vm1073_vm0, %v1072_v0 }
  0x1a   : > { %1025 = vmatprep.mubr.msk.f32.mxu1 %vm1073_vm0, %v1072_v0  ;;  %1019 = vmatpush3.msra.mxu0 %v572_v45 }
  0x1b   : > { %1028 = vmatprep.subr.mxu0 %v1072_v0  ;;  %1024 = vmatpush3.msra.mxu1 %v573_v46 }
  0x1c   : > { %1033 = vmatprep.subr.mxu1 %v1072_v0 }
  0xe7   : > { %v292_v9 = vpop.f32.mrb[0].mxu0  ;;  %v368_v10 = vpop.f32.mrb[0].mxu1 }
  0xe8   : > { %v524_v11 = vmul.f32 0.35355338, %v292_v9  ;;  %v1002_v12 = vpop.f32.mrb[1].mxu0  ;;  %v525_v13 = vmul.f32 0.35355338, %v368_v10  ;;  %v1007_v14 = vpop.f32.mrb[1].mxu1 }
  0xea   : > { %v528_v15 = vsel %vm219_vm1, %v524_v11, -inf  ;;  %v531_v20 = vsel %vm219_vm1, %v525_v13, -inf }
  0xeb   : > { %529 = vmax.xlane.f32.xlu0 %v528_v15  ;;  %v444_v16 = vpop.f32.mrb[2].mxu0 }
  0xec   : > { %v526_v17 = vmul.f32 0.35355338, %v444_v16  ;;  %v1012_v18 = vpop.f32.mrb[3].mxu0  ;;  %v520_v19 = vpop.f32.mrb[2].mxu1 }
  0xed   : > { %v527_v21 = vmul.f32 0.35355338, %v520_v19  ;;  %v1017_v22 = vpop.f32.mrb[3].mxu1 }
  0xee   : > { %v534_v23 = vsel %vm219_vm1, %v526_v17, -inf }
  0xef   : > { %532 = vmax.xlane.f32.xlu0 %v531_v20  ;;  %535 = vmax.xlane.f32.xlu1 %v534_v23  ;;  %v537_v24 = vsel %vm219_vm1, %v527_v21, -inf }
  0xf3   : > { %538 = vmax.xlane.f32.xlu1 %v537_v24 }
 0x178   : > { %v530_v25 = vpop.xlane.xlu0 %529 }
 0x179   : > { %v540_v26 = vsub.f32 %v524_v11, %v530_v25 }
 0x17b   : > { %v544_v27 = vmul.f32 1.442695, %v540_v26 }
 0x17c   : > { %v533_v28 = vpop.xlane.xlu0 %532  ;;  %v536_v29 = vpop.xlane.xlu1 %535 }
 0x17d   : > { %1048 = vpow2.f32 %v544_v27  ;;  %v541_v30 = vsub.f32 %v525_v13, %v533_v28  ;;  %v542_v31 = vsub.f32 %v526_v17, %v536_v29 }
 0x17f   : > { %v546_v32 = vmul.f32 1.442695, %v541_v30  ;;  %v548_v33 = vmul.f32 1.442695, %v542_v31 }
 0x180   : > { %v539_v34 = vpop.xlane.xlu1 %538 }
 0x181   : > { %1050 = vpow2.f32 %v546_v32  ;;  %v543_v35 = vsub.f32 %v527_v21, %v539_v34 }
 0x182   : > { %1052 = vpow2.f32 %v548_v33 }
 0x183   : > { %v550_v36 = vmul.f32 1.442695, %v543_v35 }
 0x185   : > { %1054 = vpow2.f32 %v550_v36 }
 0x187   : > { %v1049_v37 = vpop.eup %1048 }
 0x188   : > { %v552_v38 = vsel %vm219_vm1, %v1049_v37, 0.0 }
 0x189   : > { %553 = vadd.xlane.f32.xlu0 %v552_v38 }
 0x18b   : > { %v1051_v39 = vpop.eup %1050 }
 0x18c   : > { %v1053_v40 = vpop.eup %1052  ;;  %v555_v41 = vsel %vm219_vm1, %v1051_v39, 0.0 }
 0x18d   : > { %556 = vadd.xlane.f32.xlu1 %v555_v41  ;;  %v558_v42 = vsel %vm219_vm1, %v1053_v40, 0.0 }
 0x18e   : > { %559 = vadd.xlane.f32.xlu0 %v558_v42 }
 0x18f   : > { %v1055_v43 = vpop.eup %1054 }
 0x190   : > { %v561_v44 = vsel %vm219_vm1, %v1055_v43, 0.0 }
 0x191   : > { %562 = vadd.xlane.f32.xlu1 %v561_v44 }
 0x216   : > { %v554_v47 = vpop.xlane.xlu0 %553 }
 0x217   : > { %1056 = vrcp.f32 %v554_v47 }
 0x21a   : > { %v557_v48 = vpop.xlane.xlu1 %556 }
 0x21b   : > { %v560_v49 = vpop.xlane.xlu0 %559  ;;  %1058 = vrcp.f32 %v557_v48 }
 0x21c   : > { %1060 = vrcp.f32 %v560_v49 }
 0x21e   : > { %v563_v50 = vpop.xlane.xlu1 %562 }
 0x21f   : > { %1062 = vrcp.f32 %v563_v50 }
 0x221   : > { %v1057_v51 = vpop.eup %1056 }
 0x222   : > { %v568_v52 = vmul.f32 %v1057_v51, %v1049_v37 }
 0x224   : > { %1021 = vmatmul.mubr.msk.f32.vlgmr.msra.gmra.mrb[4].mxu0 %vm219_vm1, %v568_v52 }
 0x225   : > { %v1059_v54 = vpop.eup %1058  ;;  %1029 = vmatpush3.msra.mxu0 %v574_v53  ;;  %1030 = vmatprep.mubr.msk.f32.mxu0 %vm1073_vm0, %v1072_v0 }
 0x226   : > { %v1061_v55 = vpop.eup %1060  ;;  %v569_v56 = vmul.f32 %v1059_v54, %v1051_v39 }
 0x227   : > { %v570_v58 = vmul.f32 %v1061_v55, %v1053_v40 }
 0x228   : > { %1026 = vmatmul.mubr.msk.f32.vlgmr.msra.gmra.mrb[4].mxu1 %vm219_vm1, %v569_v56 }
 0x229   : > { %v1063_v59 = vpop.eup %1062  ;;  %1031 = vmatmul.mubr.msk.f32.vlgmr.msra.gmra.mrb[6].mxu0 %vm219_vm1, %v570_v58  ;;  %1034 = vmatpush3.msra.mxu1 %v575_v57 }
 0x22a   : > { %v571_v60 = vmul.f32 %v1063_v59, %v1055_v43  ;;  %1035 = vmatprep.mubr.msk.f32.mxu1 %vm1073_vm0, %v1072_v0 }
 0x22c   : > { %1036 = vmatmul.mubr.msk.f32.vlgmr.msra.gmra.mrb[6].mxu1 %vm219_vm1, %v571_v60 }
 0x2f7   : > { %v645_v61 = vpop.f32.mrb[4].mxu0 }
 0x2f8   : > { %868 = vst.msk [vmem:[%s210_s26] sm:$0xff] %vm219_vm1, %v645_v61  ;;  %v1022_v62 = vpop.f32.mrb[5].mxu0 }
 0x2fb   : > { %v718_v63 = vpop.f32.mrb[4].mxu1 }
 0x2fc   : > { %869 = vst.msk [vmem:[%s210_s26 + $0x8] sm:$0xff] %vm219_vm1, %v718_v63  ;;  %v791_v1 = vpop.f32.mrb[6].mxu0  ;;  %v1027_v2 = vpop.f32.mrb[5].mxu1 }
 0x2fd   : > { %870 = vst.msk [vmem:[%s210_s26 + $0x10] sm:$0xff] %vm219_vm1, %v791_v1  ;;  %v1032_v3 = vpop.f32.mrb[7].mxu0 }
 0x2ff   : > { %v864_v4 = vpop.f32.mrb[6].mxu1 }
 0x300   : > { %871 = vst.msk [vmem:[%s210_s26 + $0x18] sm:$0xff] %vm219_vm1, %v864_v4  ;;  %v1037_v0 = vpop.f32.mrb[7].mxu1 }
 0x301 PF: > { %s13_s12 = sadd.s32 1, %s1070_s12  }
 0x302   : > { %p10_p4 = scmp.ge.s32.totalorder %s13_s12, 4  }
 0x304   :  { %12 = sbr.rel (!%p10_p4) target bundleno = 1 (0x1), region = 68 }

// kernel: transformer_forward.13
= control target key start
LH: loop header
LB: loop body
LE: loop exit
PB: predicated region body
PF: predicated region fallthrough
CT: control target
= control target key end

     0   :  { %vm27_vm0 = vcmask 261120   ;;  %v228_v3 = vmov 0.0   ;;  %s315_s1 = inlined_call_operand.vmem [shape: f32[32,32], index: 1, kind: input, shape index: {}]   ;;  %s316_s0 = inlined_call_operand.vmem [shape: f32[16,32], index: 0, kind: input, shape index: {}]   ;;  %s317_s3 = inlined_call_operand.vmem [shape: f32[16,32], index: 3, kind: input, shape index: {}]   ;;  %s318_s2 = inlined_call_operand.vmem [shape: f32[1,32], index: 2, kind: input, shape index: {}]   ;;  %s319_s4 = inlined_call_operand.vmem [shape: f32[1,32], index: 4, kind: input, shape index: {}]   ;;  %s320_s5 = inlined_call_operand.vmem [shape: f32[1,32], index: 5, kind: input, shape index: {}]   ;;  %s321_s6 = inlined_call_operand.vmem [shape: f32[16,32], index: 6, kind: output, shape index: {}]  }
   0x1   :  { %v34_v0 = vld [vmem:[%s315_s1] sm:$0xff]  ;;  %v35_v1 = vld [vmem:[%s315_s1 + $0x8] sm:$0xff]  ;;  %v36_v2 = vld [vmem:[%s315_s1 + $0x10] sm:$0xff]  ;;  %29 = vst.msk [vmem:[#allocation2 + $0x8] sm:$0xff] %vm27_vm0, %v228_v3 }
   0x2   :  { %28 = vst.msk [vmem:[#allocation2] sm:$0xff] %vm27_vm0, %v228_v3  ;;  %v215_v4 = vpack.c.bf16 %v35_v1, %v34_v0  ;;  %v37_v5 = vld [vmem:[%s315_s1 + $0x18] sm:$0xff]  ;;  %v32_v6 = vld [vmem:[%s316_s0] sm:$0xff]  ;;  %v33_v8 = vld [vmem:[%s316_s0 + $0x8] sm:$0xff] }
   0x3   :  { %v219_v7 = vpack.c.bf16 %v37_v5, %v36_v2  ;;  %212 = vmatprep.mubr.msk.f32.mxu0 %vm27_vm0, %v32_v6  ;;  %v127_v15 = vld [vmem:[%s317_s3] sm:$0xff]  ;;  %v128_v16 = vld [vmem:[%s317_s3 + $0x8] sm:$0xff] }
   0x4   :  { %216 = vmatprep.subr.bf16.mxu0 %v215_v4  ;;  %v195_v19 = vld [vmem:[%s318_s2] ss:$0 sm:$0xff] }
   0x5   :  { %218 = vmatpush3.bf16.msra.mxu0 %v215_v4  ;;  %v196_v43 = vld [vmem:[%s319_s4] ss:$0 sm:$0xff] }
   0x6   :  { %220 = vmatprep.subr.bf16.mxu0 %v219_v7  ;;  %v197_v45 = vld [vmem:[%s320_s5] ss:$0 sm:$0xff] }
   0x8   :  { %v31_v9 = vld [vmem:[#allocation2 + $0x8] sm:$0xff] }
   0x9   :  { %222 = vmatpush3.bf16.msra.mxu0 %v219_v7  ;;  %v30_v10 = vld [vmem:[#allocation2] sm:$0xff] }
   0xc   :  { %213 = vmatmul.mubr.msk.f32.vlgmr.msra.gmra.mrb[0].mxu0 %vm27_vm0, %v33_v8 }
  0xdf   :  { %v214_v11 = vpop.f32.mrb[0].mxu0 }
  0xe0   :  { %v121_v12 = vadd.f32 %v214_v11, %v31_v9  ;;  %v111_v13 = vpop.f32.mrb[1].mxu0 }
  0xe1   :  { %v120_v14 = vadd.f32 %v111_v13, %v30_v10 }
  0xe2   :  { %123 = vst.msk [vmem:[#allocation2 + $0x8] sm:$0xff] %vm27_vm0, %v121_v12 }
  0xe3   :  { %122 = vst.msk [vmem:[#allocation2] sm:$0xff] %vm27_vm0, %v120_v14 }
  0xe9   :  { %v130_v17 = vld [vmem:[#allocation2 + $0x8] sm:$0xff] }
  0xea   :  { %v129_v18 = vld [vmem:[#allocation2] sm:$0xff]  ;;  %v132_v21 = vadd.f32 %v130_v17, %v128_v16 }
  0xeb   :  { %v131_v20 = vadd.f32 %v129_v18, %v127_v15 }
  0xec   :  { %v141_v24 = vadd.f32 %v195_v19, %v132_v21 }
  0xed   :  { %v140_v22 = vadd.f32 %v195_v19, %v131_v20 }
  0xee   :  { %v145_v25 = vsel %vm27_vm0, %v141_v24, 0.0 }
  0xef   :  { %v142_v23 = vsel %vm27_vm0, %v140_v22, 0.0 }
  0xf0   :  { %143 = vadd.xlane.f32.xlu0 %v142_v23 }
  0xf4   :  { %146 = vadd.xlane.f32.xlu0 %v145_v25 }
 0x17d   :  { %v144_v26 = vpop.xlane.xlu0 %143 }
 0x17e   :  { %v149_v27 = vmul.f32 0.03125, %v144_v26 }
 0x180   :  { %v151_v28 = vsub.f32 %v140_v22, %v149_v27 }
 0x181   :  { %v147_v29 = vpop.xlane.xlu0 %146 }
 0x182   :  { %v150_v30 = vmul.f32 0.03125, %v147_v29  ;;  %v153_v31 = vmul.f32 %v151_v28, %v151_v28 }
 0x184   :  { %v152_v32 = vsub.f32 %v141_v24, %v150_v30  ;;  %v155_v33 = vsel %vm27_vm0, %v153_v31, 0.0 }
 0x185   :  { %156 = vadd.xlane.f32.xlu1 %v155_v33 }
 0x186   :  { %v154_v34 = vmul.f32 %v152_v32, %v152_v32 }
 0x188   :  { %v158_v35 = vsel %vm27_vm0, %v154_v34, 0.0 }
 0x189   :  { %159 = vadd.xlane.f32.xlu1 %v158_v35 }
 0x212   :  { %v157_v36 = vpop.xlane.xlu1 %156 }
 0x213   :  { %v161_v37 = vmul.f32 0.03125, %v157_v36 }
 0x215   :  { %v163_v38 = vadd.f32 1e-05, %v161_v37 }
 0x216   :  { %v160_v39 = vpop.xlane.xlu1 %159 }
 0x217   :  { %224 = vrsqrt.f32 %v163_v38  ;;  %v162_v40 = vmul.f32 0.03125, %v160_v39 }
 0x219   :  { %v164_v41 = vadd.f32 1e-05, %v162_v40 }
 0x21b   :  { %226 = vrsqrt.f32 %v164_v41 }
 0x221   :  { %v225_v42 = vpop.eup %224 }
 0x222   :  { %v167_v44 = vmul.f32 %v225_v42, %v151_v28 }
 0x224   :  { %v176_v46 = vmul.f32 %v196_v43, %v167_v44 }
 0x225   :  { %v227_v47 = vpop.eup %226 }
 0x226   :  { %v185_v48 = vadd.f32 %v197_v45, %v176_v46  ;;  %v168_v49 = vmul.f32 %v227_v47, %v152_v32 }
 0x228   :  { %187 = vst.msk [vmem:[%s321_s6] sm:$0xff] %vm27_vm0, %v185_v48  ;;  %v177_v50 = vmul.f32 %v196_v43, %v168_v49 }
 0x22a   :  { %v186_v51 = vadd.f32 %v197_v45, %v177_v50 }
 0x22c   :  { %188 = vst.msk [vmem:[%s321_s6 + $0x8] sm:$0xff] %vm27_vm0, %v186_v51 }

// kernel: transformer_forward.21
= control target key start
LH: loop header
LB: loop body
LE: loop exit
PB: predicated region body
PF: predicated region fallthrough
CT: control target
= control target key end

     0   :  { %vm30_vm0 = vcmask 261120   ;;  %vm19_vm1 = vcmask 523264   ;;  %v205_v6 = vmov 0.0   ;;  %s270_s0 = inlined_call_operand.vmem [shape: f32[16,32], index: 0, kind: input, shape index: {}]   ;;  %s271_s1 = inlined_call_operand.vmem [shape: f32[32,64], index: 1, kind: input, shape index: {}]   ;;  %s272_s2 = inlined_call_operand.vmem [shape: f32[1,64], index: 2, kind: input, shape index: {}]   ;;  %s273_s3 = inlined_call_operand.hbm [shape: f32[16,64], index: 3, kind: output, shape index: {}]  }
   0x1   :  { %v26_v0 = vld [vmem:[%s271_s1] sm:$0xff]  ;;  %v27_v1 = vld [vmem:[%s271_s1 + $0x8] sm:$0xff]  ;;  %v28_v2 = vld [vmem:[%s271_s1 + $0x10] sm:$0xff]  ;;  %21 = vst.msk [vmem:[#allocation2 + $0x8] sm:$0xff] %vm19_vm1, %v205_v6 }
   0x2   :  { %v169_v3 = vpack.c.bf16 %v27_v1, %v26_v0  ;;  %v29_v4 = vld [vmem:[%s271_s1 + $0x18] sm:$0xff]  ;;  %v24_v5 = vld [vmem:[%s270_s0] sm:$0xff]  ;;  %20 = vst.msk [vmem:[#allocation2] sm:$0xff] %vm19_vm1, %v205_v6 }
   0x3   :  { %v173_v7 = vpack.c.bf16 %v29_v4, %v28_v2  ;;  %166 = vmatprep.mubr.msk.f32.mxu0 %vm30_vm0, %v24_v5 }
   0x4   :  { %8 = vsyncpa [#allocation4], 0  ;;  %170 = vmatprep.subr.bf16.mxu0 %v169_v3  ;;  %v25_v8 = vld [vmem:[%s270_s0 + $0x8] sm:$0xff]  ;;  %v151_v15 = vld [vmem:[%s272_s2] ss:$0 sm:$0xff]  ;;  %s206_s25 = smov [#allocation3]  }
   0x5   :  { %172 = vmatpush3.bf16.msra.mxu0 %v169_v3  ;;  %s138_s26 = sshll.u32 %s206_s25, 4  ;;  %s139_s26 = int_to_ptr.vmem [resolvable:$true] %s138_s26 }
   0x6   :  { %174 = vmatprep.subr.bf16.mxu0 %v173_v7  ;;  %s181_s0 = scalar_lea.vmem %s139_s26, 256  ;;  %p186_p1 = scmp.lt.s32.totalorder %s139_s26, %s139_s26 }
   0x7   :  { %p182_p0 = scmp.ne.s32.totalorder %s139_s26, %s181_s0  ;;  %p187_p2 = scmp.lt.s32.totalorder %s181_s0, %s181_s0 }
   0x8   :  { %v23_v9 = vld [vmem:[#allocation2 + $0x8] sm:$0xff] }
   0x9   :  { %176 = vmatpush3.bf16.msra.mxu0 %v173_v7  ;;  %v22_v10 = vld [vmem:[#allocation2] sm:$0xff]  ;;  %p188_p3 = por %p187_p2, %p186_p1 }
   0xb   :  { %p189_p4 = pnand %p188_p3, %p182_p0 }
   0xc   :  { %167 = vmatmul.mubr.msk.f32.vlgmr.msra.gmra.mrb[0].mxu0 %vm30_vm0, %v25_v8 }
  0xdf   :  { %v168_v11 = vpop.f32.mrb[0].mxu0 }
  0xe0   :  { %v113_v12 = vadd.f32 %v168_v11, %v23_v9  ;;  %v103_v13 = vpop.f32.mrb[1].mxu0 }
  0xe1   :  { %v112_v14 = vadd.f32 %v103_v13, %v22_v10 }
  0xe2   :  { %116 = vst.msk [vmem:[#allocation2 + $0x8] sm:$0xff] %vm19_vm1, %v113_v12 }
  0xe3   :  { %115 = vst.msk [vmem:[#allocation2] sm:$0xff] %vm19_vm1, %v112_v14 }
  0xe9   :  { %v121_v16 = vld [vmem:[#allocation2 + $0x8] sm:$0xff] }
  0xea   :  { %v120_v17 = vld [vmem:[#allocation2] sm:$0xff]  ;;  %v130_v18 = vadd.f32 %v151_v15, %v121_v16 }
  0xeb   :  { %v129_v19 = vadd.f32 %v151_v15, %v120_v17 }
  0xec   :  { %132 = vst.msk [vmem:[#allocation3 + $0x8] sm:$0xff] %vm19_vm1, %v130_v18 }
  0xed   :  { %131 = vst.msk [vmem:[#allocation3] sm:$0xff] %vm19_vm1, %v129_v19 }
  0xee   :  { %192 = shalt.err (!%p189_p4)
}
  0xef   :  { %s193_s28 = scalar_lea.hbm %s273_s3, 256 }
  0xf0   :  { %p194_p5 = scmp.ne.s32.totalorder %s273_s3, %s193_s28  ;;  %p197_p6 = scmp.lt.u32.totalorder %s193_s28, %s273_s3 }
  0xf2   :  { %p199_p7 = pnand %p197_p6, %p194_p5 }
  0xf4   :  { %202 = shalt.err (!%p199_p7)
}
  0xf5   :  { %s207_s6 = smov 128   ;;  %s208_s7 = smov 8  }
  0xf6   :  { %144 = dma.vmem_to_hbm [thread:$0]  %s139_s26, 256, %s273_s3, [#allocation4], %s207_s6, %s207_s6, %s208_s7  }
  0xf7   :  { %203 = dma.done.wait [#allocation4], 256  }
  0xf8   :  { %204 = vsyncadd [#allocation4], 4294967040 }
  0xf9   :  { %148 = vsyncpa [#allocation4], 1 }

// kernel: transformer_forward.15
= control target key start
LH: loop header
LB: loop body
LE: loop exit
PB: predicated region body
PF: predicated region fallthrough
CT: control target
= control target key end

     0   :  { %vm27_vm0 = vcmask 261120   ;;  %vm42_vm1 = vcmask 523264   ;;  %v253_v3 = vmov 0.0   ;;  %s352_s1 = inlined_call_operand.vmem [shape: f32[64,32], index: 1, kind: input, shape index: {}]   ;;  %s353_s0 = inlined_call_operand.vmem [shape: f32[16,64], index: 0, kind: input, shape index: {}]   ;;  %s354_s3 = inlined_call_operand.vmem [shape: f32[16,32], index: 3, kind: input, shape index: {}]   ;;  %s355_s2 = inlined_call_operand.vmem [shape: f32[1,32], index: 2, kind: input, shape index: {}]   ;;  %s356_s4 = inlined_call_operand.vmem [shape: f32[1,32], index: 4, kind: input, shape index: {}]   ;;  %s357_s5 = inlined_call_operand.vmem [shape: f32[1,32], index: 5, kind: input, shape index: {}]   ;;  %s358_s6 = inlined_call_operand.vmem [shape: f32[16,32], index: 6, kind: output, shape index: {}]  }
   0x1   :  { %v34_v0 = vld [vmem:[%s352_s1] sm:$0xff]  ;;  %v35_v1 = vld [vmem:[%s352_s1 + $0x8] sm:$0xff]  ;;  %v36_v2 = vld [vmem:[%s352_s1 + $0x10] sm:$0xff]  ;;  %29 = vst.msk [vmem:[#allocation2 + $0x8] sm:$0xff] %vm27_vm0, %v253_v3 }
   0x2   :  { %28 = vst.msk [vmem:[#allocation2] sm:$0xff] %vm27_vm0, %v253_v3  ;;  %v232_v4 = vpack.c.bf16 %v35_v1, %v34_v0  ;;  %v37_v5 = vld [vmem:[%s352_s1 + $0x18] sm:$0xff]  ;;  %v38_v7 = vld [vmem:[%s352_s1 + $0x20] sm:$0xff]  ;;  %v39_v8 = vld [vmem:[%s352_s1 + $0x28] sm:$0xff] }
   0x3   :  { %v236_v6 = vpack.c.bf16 %v37_v5, %v36_v2  ;;  %v32_v9 = vld [vmem:[%s353_s0] sm:$0xff]  ;;  %v240_v10 = vpack.c.bf16 %v39_v8, %v38_v7  ;;  %v40_v11 = vld [vmem:[%s352_s1 + $0x30] sm:$0xff]  ;;  %v41_v12 = vld [vmem:[%s352_s1 + $0x38] sm:$0xff] }
   0x4   :  { %233 = vmatprep.subr.bf16.mxu0 %v232_v4  ;;  %229 = vmatprep.mubr.msk.f32.mxu0 %vm42_vm1, %v32_v9  ;;  %v244_v13 = vpack.c.bf16 %v41_v12, %v40_v11  ;;  %v33_v14 = vld [vmem:[%s353_s0 + $0x8] sm:$0xff]  ;;  %v132_v21 = vld [vmem:[%s354_s3] sm:$0xff] }
   0x5   :  { %235 = vmatpush3.bf16.msra.mxu0 %v232_v4  ;;  %v133_v22 = vld [vmem:[%s354_s3 + $0x8] sm:$0xff]  ;;  %v200_v25 = vld [vmem:[%s355_s2] ss:$0 sm:$0xff] }
   0x6   :  { %237 = vmatprep.subr.bf16.mxu0 %v236_v6  ;;  %v201_v49 = vld [vmem:[%s356_s4] ss:$0 sm:$0xff] }
   0x7   :  { %v202_v51 = vld [vmem:[%s357_s5] ss:$0 sm:$0xff] }
   0x8   :  { %v31_v15 = vld [vmem:[#allocation2 + $0x8] sm:$0xff] }
   0x9   :  { %239 = vmatpush3.bf16.msra.mxu0 %v236_v6  ;;  %v30_v16 = vld [vmem:[#allocation2] sm:$0xff] }
   0xa   :  { %241 = vmatprep.subr.bf16.mxu0 %v240_v10 }
   0xd   :  { %243 = vmatpush3.bf16.msra.mxu0 %v240_v10 }
   0xe   :  { %245 = vmatprep.subr.bf16.mxu0 %v244_v13 }
  0x11   :  { %247 = vmatpush3.bf16.msra.mxu0 %v244_v13 }
  0x14   :  { %230 = vmatmul.mubr.msk.f32.vlgmr.msra.gmra.mrb[0].mxu0 %vm42_vm1, %v33_v14 }
  0xe7   :  { %v231_v17 = vpop.f32.mrb[0].mxu0 }
  0xe8   :  { %v125_v18 = vadd.f32 %v231_v17, %v31_v15  ;;  %v115_v19 = vpop.f32.mrb[1].mxu0 }
  0xe9   :  { %v124_v20 = vadd.f32 %v115_v19, %v30_v16 }
  0xea   :  { %128 = vst.msk [vmem:[#allocation2 + $0x8] sm:$0xff] %vm27_vm0, %v125_v18 }
  0xeb   :  { %127 = vst.msk [vmem:[#allocation2] sm:$0xff] %vm27_vm0, %v124_v20 }
  0xf1   :  { %v135_v23 = vld [vmem:[#allocation2 + $0x8] sm:$0xff] }
  0xf2   :  { %v134_v24 = vld [vmem:[#allocation2] sm:$0xff]  ;;  %v137_v27 = vadd.f32 %v135_v23, %v133_v22 }
  0xf3   :  { %v136_v26 = vadd.f32 %v134_v24, %v132_v21 }
  0xf4   :  { %v146_v30 = vadd.f32 %v200_v25, %v137_v27 }
  0xf5   :  { %v145_v28 = vadd.f32 %v200_v25, %v136_v26 }
  0xf6   :  { %v150_v31 = vsel %vm27_vm0, %v146_v30, 0.0 }
  0xf7   :  { %v147_v29 = vsel %vm27_vm0, %v145_v28, 0.0 }
  0xf8   :  { %148 = vadd.xlane.f32.xlu0 %v147_v29 }
  0xfc   :  { %151 = vadd.xlane.f32.xlu0 %v150_v31 }
 0x185   :  { %v149_v32 = vpop.xlane.xlu0 %148 }
 0x186   :  { %v154_v33 = vmul.f32 0.03125, %v149_v32 }
 0x188   :  { %v156_v34 = vsub.f32 %v145_v28, %v154_v33 }
 0x189   :  { %v152_v35 = vpop.xlane.xlu0 %151 }
 0x18a   :  { %v155_v36 = vmul.f32 0.03125, %v152_v35  ;;  %v158_v37 = vmul.f32 %v156_v34, %v156_v34 }
 0x18c   :  { %v157_v38 = vsub.f32 %v146_v30, %v155_v36  ;;  %v160_v39 = vsel %vm27_vm0, %v158_v37, 0.0 }
 0x18d   :  { %161 = vadd.xlane.f32.xlu1 %v160_v39 }
 0x18e   :  { %v159_v40 = vmul.f32 %v157_v38, %v157_v38 }
 0x190   :  { %v163_v41 = vsel %vm27_vm0, %v159_v40, 0.0 }
 0x191   :  { %164 = vadd.xlane.f32.xlu1 %v163_v41 }
 0x21a   :  { %v162_v42 = vpop.xlane.xlu1 %161 }
 0x21b   :  { %v166_v43 = vmul.f32 0.03125, %v162_v42 }
 0x21d   :  { %v168_v44 = vadd.f32 1e-05, %v166_v43 }
 0x21e   :  { %v165_v45 = vpop.xlane.xlu1 %164 }
 0x21f   :  { %249 = vrsqrt.f32 %v168_v44  ;;  %v167_v46 = vmul.f32 0.03125, %v165_v45 }
 0x221   :  { %v169_v47 = vadd.f32 1e-05, %v167_v46 }
 0x223   :  { %251 = vrsqrt.f32 %v169_v47 }
 0x229   :  { %v250_v48 = vpop.eup %249 }
 0x22a   :  { %v172_v50 = vmul.f32 %v250_v48, %v156_v34 }
 0x22c   :  { %v181_v52 = vmul.f32 %v201_v49, %v172_v50 }
 0x22d   :  { %v252_v53 = vpop.eup %251 }
 0x22e   :  { %v190_v54 = vadd.f32 %v202_v51, %v181_v52  ;;  %v173_v55 = vmul.f32 %v252_v53, %v157_v38 }
 0x230   :  { %192 = vst.msk [vmem:[%s358_s6] sm:$0xff] %vm27_vm0, %v190_v54  ;;  %v182_v56 = vmul.f32 %v201_v49, %v173_v55 }
 0x232   :  { %v191_v57 = vadd.f32 %v202_v51, %v182_v56 }
 0x234   :  { %193 = vst.msk [vmem:[%s358_s6 + $0x8] sm:$0xff] %vm27_vm0, %v191_v57 }

</bundles_post_ra>
